<compile_context>
chip_gen: v6e
topology: v6e:2x2x1
jax: 0.10.0
libtpu: 0.0.40
codegen_flags: <defaults>
</compile_context>

<pallas_src>
import functools

import jax
import jax.numpy as jnp
from jax import lax
from jax.experimental import pallas as pl
from jax.experimental.pallas import tpu as pltpu


def _multi_ltc_kernel(
    # inputs (all resident in VMEM for the whole call)
    x1p_ref,                      # (T, B, H) hoisted layer-1 input projection (incl. b1_in)
    w1h_ref, b1h_ref,             # (H, H), (1, H)
    w2i_ref, w2h_ref, b2_ref,     # (H, H), (H, H), (1, H)   b2 = b2_in + b2_h
    w3i_ref, w3h_ref, b3_ref,     # (H, H), (H, H), (1, H)   b3 = b3_in + b3_h
    wfc_ref, bfc_ref,             # (H, O), (1, O)
    # outputs
    out_ref,                      # (B, O)
    dx1_ref, dx2_ref, dx3_ref,    # (T, B, H)
    *, tau1, tau2, tau3,
):
    T, B, H = x1p_ref.shape
    f32 = jnp.float32

    # Hoist all parameter loads / broadcasts out of the time loop.
    w1h = w1h_ref[...]
    w2i = w2i_ref[...]
    w2h = w2h_ref[...]
    w3i = w3i_ref[...]
    w3h = w3h_ref[...]
    b1h = jnp.broadcast_to(b1h_ref[...], (B, H))
    b2 = jnp.broadcast_to(b2_ref[...], (B, H))
    b3 = jnp.broadcast_to(b3_ref[...], (B, H))

    # Division-free rewrite requires tau > 0 (true for the module defaults).
    inv_t1, inv_t2, inv_t3 = 1.0 / tau1, 1.0 / tau2, 1.0 / tau3

    def cell(combined, h, inv_tau):
        s = jax.nn.sigmoid(combined)                     # time_constant_effect (EUP)
        inv_dyn_tau = jnp.clip(inv_tau + s, 1.0, 10.0)   # == 1 / clamp(tau/(1+tau*s), .1, 1.)
        dx = s * combined - h * inv_dyn_tau
        return h + dx, dx

    def step(t, carry):
        h1, h2, h3 = carry

        # layer 1: input path precomputed (x1p already holds x_t @ W1_in + b1_in)
        c1 = x1p_ref[t] + jnp.dot(h1, w1h, preferred_element_type=f32) + b1h
        h1n, dx1 = cell(c1, h1, inv_t1)

        # layer 2
        c2 = (jnp.dot(h1n, w2i, preferred_element_type=f32)
              + jnp.dot(h2, w2h, preferred_element_type=f32) + b2)
        h2n, dx2 = cell(c2, h2, inv_t2)

        # layer 3
        c3 = (jnp.dot(h2n, w3i, preferred_element_type=f32)
              + jnp.dot(h3, w3h, preferred_element_type=f32) + b3)
        h3n, dx3 = cell(c3, h3, inv_t3)

        # VMEM-resident output blocks; single HBM writeback at kernel exit.
        dx1_ref[t] = dx1
        dx2_ref[t] = dx2
        dx3_ref[t] = dx3
        return h1n, h2n, h3n

    h0 = jnp.zeros((B, H), f32)
    _, _, h3 = lax.fori_loop(0, T, step, (h0, h0, h0), unroll=True)

    out_ref[...] = jnp.dot(h3, wfc_ref[...], preferred_element_type=f32) + bfc_ref[...]


@functools.partial(jax.jit, static_argnames=("tau1", "tau2", "tau3"))
def multi_sequence_ltc(x, params, *, tau1=1.0, tau2=1.0, tau3=1.0):
    """x: (batch, seq, input_size) float32.  Returns (out, dx_dt_values)."""
    B, T, _ = x.shape
    H = params["w1h"].shape[0]
    O = params["wfc"].shape[1]
    f32 = jnp.float32

    x_tm = jnp.transpose(x, (1, 0, 2)).astype(f32)                     # (T, B, I)
    # Hoisted layer-1 input projection: one matmul for all T timesteps.
    x1p = jnp.dot(x_tm, params["w1i"], preferred_element_type=f32) + params["b1i"]
    # Pre-summed biases for layers 2/3 (input bias + hidden bias).
    b2 = params["b2i"] + params["b2h"]
    b3 = params["b3i"] + params["b3h"]

    vmem = pl.BlockSpec(memory_space=pltpu.MemorySpace.VMEM)
    kernel = functools.partial(_multi_ltc_kernel, tau1=tau1, tau2=tau2, tau3=tau3)

    out_shapes = (
        jax.ShapeDtypeStruct((B, O), f32),      # out
        jax.ShapeDtypeStruct((T, B, H), f32),   # dx/dt layer1
        jax.ShapeDtypeStruct((T, B, H), f32),   # dx/dt layer2
        jax.ShapeDtypeStruct((T, B, H), f32),   # dx/dt layer3
    )

    out, dx1, dx2, dx3 = pl.pallas_call(
        kernel,
        out_shape=out_shapes,
        in_specs=[vmem] * 11,
        out_specs=(vmem, vmem, vmem, vmem),
    )(
        x1p,
        params["w1h"], params["b1h"],
        params["w2i"], params["w2h"], b2,
        params["w3i"], params["w3h"], b3,
        params["wfc"], params["bfc"],
    )

    dx_dt_values = {"layer1": dx1, "layer2": dx2, "layer3": dx3}  # (T, B, H) each
    return out, dx_dt_values


# --------------------------- pure-JAX reference ------------------------------
def _ltc_step_ref(x_t, h, w_in, b_in, w_h, b_h, tau):
    """Faithful LTC cell (original formula with clamp + divisions)."""
    combined = (jnp.dot(x_t, w_in) + b_in) + (jnp.dot(h, w_h) + b_h)
    s = jax.nn.sigmoid(combined)
    dyn_tau = jnp.clip(tau / (1.0 + tau * s), 0.1, 1.0)
    dx_dt = s * combined - h / dyn_tau
    return h + dx_dt, dx_dt


def _reference(x, params, *, tau1=1.0, tau2=1.0, tau3=1.0):
    B, T, _ = x.shape
    H = params["w1h"].shape[0]
    h1 = jnp.zeros((B, H), jnp.float32)
    h2 = jnp.zeros((B, H), jnp.float32)
    h3 = jnp.zeros((B, H), jnp.float32)
    dxs = {"layer1": [], "layer2": [], "layer3": []}
    for t in range(T):
        h1, d1 = _ltc_step_ref(x[:, t, :], h1, params["w1i"], params["b1i"],
                               params["w1h"], params["b1h"], tau1)
        h2, d2 = _ltc_step_ref(h1, h2, params["w2i"], params["b2i"],
                               params["w2h"], params["b2h"], tau2)
        h3, d3 = _ltc_step_ref(h2, h3, params["w3i"], params["b3i"],
                               params["w3h"], params["b3h"], tau3)
        dxs["layer1"].append(d1)
        dxs["layer2"].append(d2)
        dxs["layer3"].append(d3)
    out = jnp.dot(h3, params["wfc"]) + params["bfc"]
    return out, {k: jnp.stack(v, 0) for k, v in dxs.items()}


def _init_params(key, input_size, hidden_size, output_size):
    """Deterministic parameter init (weights stored as (in, out) = W.T)."""
    ks = jax.random.split(key, 14)
    f32 = jnp.float32

    def lin(kw, kb, fan_in, fan_out):
        bound = 1.0 / jnp.sqrt(fan_in)
        w = jax.random.uniform(kw, (fan_in, fan_out), f32, -bound, bound)
        b = jax.random.uniform(kb, (1, fan_out), f32, -bound, bound)
        return w, b

    w1i, b1i = lin(ks[0], ks[1], input_size, hidden_size)
    w1h, b1h = lin(ks[2], ks[3], hidden_size, hidden_size)
    w2i, b2i = lin(ks[4], ks[5], hidden_size, hidden_size)
    w2h, b2h = lin(ks[6], ks[7], hidden_size, hidden_size)
    w3i, b3i = lin(ks[8], ks[9], hidden_size, hidden_size)
    w3h, b3h = lin(ks[10], ks[11], hidden_size, hidden_size)
    wfc, bfc = lin(ks[12], ks[13], hidden_size, output_size)
    return dict(w1i=w1i, b1i=b1i, w1h=w1h, b1h=b1h,
                w2i=w2i, b2i=b2i, w2h=w2h, b2h=b2h,
                w3i=w3i, b3i=b3i, w3h=w3h, b3h=b3h,
                wfc=wfc, bfc=bfc)


if __name__ == "__main__":
    # small shapes consistent with the module defaults
    batch, seq, input_size, hidden_size, output_size = 2, 8, 2, 30, 2

    key = jax.random.PRNGKey(0)
    kx, kp = jax.random.split(key)
    x = jax.random.normal(kx, (batch, seq, input_size), jnp.float32)
    params = _init_params(kp, input_size, hidden_size, output_size)

    out, dx_dt = multi_sequence_ltc(x, params)
    out = jax.block_until_ready(out)
    jax.block_until_ready(dx_dt)

    # sanity check against pure-JAX reference (original clamp/divide formula)
    ref_out, ref_dx = _reference(x, params)
    assert jnp.allclose(out, ref_out, atol=1e-5, rtol=1e-5)
    for k in ("layer1", "layer2", "layer3"):
        assert jnp.allclose(dx_dt[k], ref_dx[k], atol=1e-5, rtol=1e-5)

    print("KERNEL_OK")
</pallas_src>

<mosaic_0001>
module attributes {stable_mosaic.version = 11 : i64} {
  func.func @_multi_ltc_kernel(%arg0: memref<8x2x30xf32, #tpu.memory_space<vmem>>, %arg1: memref<30x30xf32, #tpu.memory_space<vmem>>, %arg2: memref<1x30xf32, #tpu.memory_space<vmem>>, %arg3: memref<30x30xf32, #tpu.memory_space<vmem>>, %arg4: memref<30x30xf32, #tpu.memory_space<vmem>>, %arg5: memref<1x30xf32, #tpu.memory_space<vmem>>, %arg6: memref<30x30xf32, #tpu.memory_space<vmem>>, %arg7: memref<30x30xf32, #tpu.memory_space<vmem>>, %arg8: memref<1x30xf32, #tpu.memory_space<vmem>>, %arg9: memref<30x2xf32, #tpu.memory_space<vmem>>, %arg10: memref<1x2xf32, #tpu.memory_space<vmem>>, %arg11: memref<2x2xf32, #tpu.memory_space<vmem>>, %arg12: memref<8x2x30xf32, #tpu.memory_space<vmem>>, %arg13: memref<8x2x30xf32, #tpu.memory_space<vmem>>, %arg14: memref<8x2x30xf32, #tpu.memory_space<vmem>>) attributes {dimension_semantics = [], scalar_prefetch = 0 : i64, scratch_operands = 0 : i64, tpu.core_type = #tpu.core_type<tc>} {
    %c0 = arith.constant 0 : index
    %c0_0 = arith.constant 0 : index
    %0 = vector.load %arg1[%c0, %c0_0] : memref<30x30xf32, #tpu.memory_space<vmem>>, vector<30x30xf32>
    %c0_1 = arith.constant 0 : index
    %c0_2 = arith.constant 0 : index
    %1 = vector.load %arg3[%c0_1, %c0_2] : memref<30x30xf32, #tpu.memory_space<vmem>>, vector<30x30xf32>
    %c0_3 = arith.constant 0 : index
    %c0_4 = arith.constant 0 : index
    %2 = vector.load %arg4[%c0_3, %c0_4] : memref<30x30xf32, #tpu.memory_space<vmem>>, vector<30x30xf32>
    %c0_5 = arith.constant 0 : index
    %c0_6 = arith.constant 0 : index
    %3 = vector.load %arg6[%c0_5, %c0_6] : memref<30x30xf32, #tpu.memory_space<vmem>>, vector<30x30xf32>
    %c0_7 = arith.constant 0 : index
    %c0_8 = arith.constant 0 : index
    %4 = vector.load %arg7[%c0_7, %c0_8] : memref<30x30xf32, #tpu.memory_space<vmem>>, vector<30x30xf32>
    %c0_9 = arith.constant 0 : index
    %c0_10 = arith.constant 0 : index
    %5 = vector.load %arg2[%c0_9, %c0_10] : memref<1x30xf32, #tpu.memory_space<vmem>>, vector<1x30xf32>
    %6 = vector.shape_cast %5 : vector<1x30xf32> to vector<1x30xf32>
    %7 = vector.broadcast %6 : vector<1x30xf32> to vector<2x30xf32>
    %c0_11 = arith.constant 0 : index
    %c0_12 = arith.constant 0 : index
    %8 = vector.load %arg5[%c0_11, %c0_12] : memref<1x30xf32, #tpu.memory_space<vmem>>, vector<1x30xf32>
    %9 = vector.shape_cast %8 : vector<1x30xf32> to vector<1x30xf32>
    %10 = vector.broadcast %9 : vector<1x30xf32> to vector<2x30xf32>
    %c0_13 = arith.constant 0 : index
    %c0_14 = arith.constant 0 : index
    %11 = vector.load %arg8[%c0_13, %c0_14] : memref<1x30xf32, #tpu.memory_space<vmem>>, vector<1x30xf32>
    %12 = vector.shape_cast %11 : vector<1x30xf32> to vector<1x30xf32>
    %13 = vector.broadcast %12 : vector<1x30xf32> to vector<2x30xf32>
    %cst = arith.constant 0.000000e+00 : f32
    %14 = vector.broadcast %cst : f32 to vector<2x30xf32>
    %c0_i32 = arith.constant 0 : i32
    %15 = arith.index_cast %c0_i32 : i32 to index
    %c0_15 = arith.constant 0 : index
    %c0_16 = arith.constant 0 : index
    %16 = vector.load %arg0[%15, %c0_15, %c0_16] : memref<8x2x30xf32, #tpu.memory_space<vmem>>, vector<1x2x30xf32>
    %17 = vector.shape_cast %16 : vector<1x2x30xf32> to vector<2x30xf32>
    %cst_17 = arith.constant dense<0.000000e+00> : vector<2x30xf32>
    %18 = tpu.matmul %14, %0, %cst_17 {dimension_numbers = #tpu.dot_dimension_numbers<[1], [0], [0], [1], [0, 0, 1, 1], [], []>} : vector<2x30xf32>, vector<30x30xf32>, vector<2x30xf32> -> vector<2x30xf32>
    %19 = arith.addf %17, %18 : vector<2x30xf32>
    %20 = arith.addf %19, %7 : vector<2x30xf32>
    %21 = arith.negf %20 : vector<2x30xf32>
    %22 = math.exp %21 : vector<2x30xf32>
    %cst_18 = arith.constant 1.000000e+00 : f32
    %23 = vector.broadcast %cst_18 : f32 to vector<2x30xf32>
    %24 = arith.addf %23, %22 : vector<2x30xf32>
    %25 = arith.divf %23, %24 : vector<2x30xf32>
    %cst_19 = arith.constant 1.000000e+00 : f32
    %26 = vector.broadcast %cst_19 : f32 to vector<2x30xf32>
    %27 = arith.addf %26, %25 : vector<2x30xf32>
    %cst_20 = arith.constant 1.000000e+00 : f32
    %cst_21 = arith.constant 1.000000e+01 : f32
    %28 = vector.broadcast %cst_20 : f32 to vector<2x30xf32>
    %29 = arith.maximumf %28, %27 : vector<2x30xf32>
    %30 = vector.broadcast %cst_21 : f32 to vector<2x30xf32>
    %31 = arith.minimumf %30, %29 : vector<2x30xf32>
    %32 = arith.mulf %25, %20 : vector<2x30xf32>
    %33 = arith.mulf %14, %31 : vector<2x30xf32>
    %34 = arith.subf %32, %33 : vector<2x30xf32>
    %35 = arith.addf %14, %34 : vector<2x30xf32>
    %cst_22 = arith.constant dense<0.000000e+00> : vector<2x30xf32>
    %36 = tpu.matmul %35, %1, %cst_22 {dimension_numbers = #tpu.dot_dimension_numbers<[1], [0], [0], [1], [0, 0, 1, 1], [], []>} : vector<2x30xf32>, vector<30x30xf32>, vector<2x30xf32> -> vector<2x30xf32>
    %cst_23 = arith.constant dense<0.000000e+00> : vector<2x30xf32>
    %37 = tpu.matmul %14, %2, %cst_23 {dimension_numbers = #tpu.dot_dimension_numbers<[1], [0], [0], [1], [0, 0, 1, 1], [], []>} : vector<2x30xf32>, vector<30x30xf32>, vector<2x30xf32> -> vector<2x30xf32>
    %38 = arith.addf %36, %37 : vector<2x30xf32>
    %39 = arith.addf %38, %10 : vector<2x30xf32>
    %40 = arith.negf %39 : vector<2x30xf32>
    %41 = math.exp %40 : vector<2x30xf32>
    %cst_24 = arith.constant 1.000000e+00 : f32
    %42 = vector.broadcast %cst_24 : f32 to vector<2x30xf32>
    %43 = arith.addf %42, %41 : vector<2x30xf32>
    %44 = arith.divf %42, %43 : vector<2x30xf32>
    %cst_25 = arith.constant 1.000000e+00 : f32
    %45 = vector.broadcast %cst_25 : f32 to vector<2x30xf32>
    %46 = arith.addf %45, %44 : vector<2x30xf32>
    %cst_26 = arith.constant 1.000000e+00 : f32
    %cst_27 = arith.constant 1.000000e+01 : f32
    %47 = vector.broadcast %cst_26 : f32 to vector<2x30xf32>
    %48 = arith.maximumf %47, %46 : vector<2x30xf32>
    %49 = vector.broadcast %cst_27 : f32 to vector<2x30xf32>
    %50 = arith.minimumf %49, %48 : vector<2x30xf32>
    %51 = arith.mulf %44, %39 : vector<2x30xf32>
    %52 = arith.mulf %14, %50 : vector<2x30xf32>
    %53 = arith.subf %51, %52 : vector<2x30xf32>
    %54 = arith.addf %14, %53 : vector<2x30xf32>
    %cst_28 = arith.constant dense<0.000000e+00> : vector<2x30xf32>
    %55 = tpu.matmul %54, %3, %cst_28 {dimension_numbers = #tpu.dot_dimension_numbers<[1], [0], [0], [1], [0, 0, 1, 1], [], []>} : vector<2x30xf32>, vector<30x30xf32>, vector<2x30xf32> -> vector<2x30xf32>
    %cst_29 = arith.constant dense<0.000000e+00> : vector<2x30xf32>
    %56 = tpu.matmul %14, %4, %cst_29 {dimension_numbers = #tpu.dot_dimension_numbers<[1], [0], [0], [1], [0, 0, 1, 1], [], []>} : vector<2x30xf32>, vector<30x30xf32>, vector<2x30xf32> -> vector<2x30xf32>
    %57 = arith.addf %55, %56 : vector<2x30xf32>
    %58 = arith.addf %57, %13 : vector<2x30xf32>
    %59 = arith.negf %58 : vector<2x30xf32>
    %60 = math.exp %59 : vector<2x30xf32>
    %cst_30 = arith.constant 1.000000e+00 : f32
    %61 = vector.broadcast %cst_30 : f32 to vector<2x30xf32>
    %62 = arith.addf %61, %60 : vector<2x30xf32>
    %63 = arith.divf %61, %62 : vector<2x30xf32>
    %cst_31 = arith.constant 1.000000e+00 : f32
    %64 = vector.broadcast %cst_31 : f32 to vector<2x30xf32>
    %65 = arith.addf %64, %63 : vector<2x30xf32>
    %cst_32 = arith.constant 1.000000e+00 : f32
    %cst_33 = arith.constant 1.000000e+01 : f32
    %66 = vector.broadcast %cst_32 : f32 to vector<2x30xf32>
    %67 = arith.maximumf %66, %65 : vector<2x30xf32>
    %68 = vector.broadcast %cst_33 : f32 to vector<2x30xf32>
    %69 = arith.minimumf %68, %67 : vector<2x30xf32>
    %70 = arith.mulf %63, %58 : vector<2x30xf32>
    %71 = arith.mulf %14, %69 : vector<2x30xf32>
    %72 = arith.subf %70, %71 : vector<2x30xf32>
    %73 = arith.addf %14, %72 : vector<2x30xf32>
    %74 = arith.index_cast %c0_i32 : i32 to index
    %c0_34 = arith.constant 0 : index
    %c0_35 = arith.constant 0 : index
    %75 = vector.load %arg12[%74, %c0_34, %c0_35] : memref<8x2x30xf32, #tpu.memory_space<vmem>>, vector<1x2x30xf32>
    %76 = vector.shape_cast %75 : vector<1x2x30xf32> to vector<2x30xf32>
    %77 = vector.shape_cast %34 : vector<2x30xf32> to vector<1x2x30xf32>
    tpu.vector_store %arg12[%74, %c0_34, %c0_35], %77 {strides = array<i32>} : memref<8x2x30xf32, #tpu.memory_space<vmem>>, vector<1x2x30xf32>,
    %78 = arith.index_cast %c0_i32 : i32 to index
    %c0_36 = arith.constant 0 : index
    %c0_37 = arith.constant 0 : index
    %79 = vector.load %arg13[%78, %c0_36, %c0_37] : memref<8x2x30xf32, #tpu.memory_space<vmem>>, vector<1x2x30xf32>
    %80 = vector.shape_cast %79 : vector<1x2x30xf32> to vector<2x30xf32>
    %81 = vector.shape_cast %53 : vector<2x30xf32> to vector<1x2x30xf32>
    tpu.vector_store %arg13[%78, %c0_36, %c0_37], %81 {strides = array<i32>} : memref<8x2x30xf32, #tpu.memory_space<vmem>>, vector<1x2x30xf32>,
    %82 = arith.index_cast %c0_i32 : i32 to index
    %c0_38 = arith.constant 0 : index
    %c0_39 = arith.constant 0 : index
    %83 = vector.load %arg14[%82, %c0_38, %c0_39] : memref<8x2x30xf32, #tpu.memory_space<vmem>>, vector<1x2x30xf32>
    %84 = vector.shape_cast %83 : vector<1x2x30xf32> to vector<2x30xf32>
    %85 = vector.shape_cast %72 : vector<2x30xf32> to vector<1x2x30xf32>
    tpu.vector_store %arg14[%82, %c0_38, %c0_39], %85 {strides = array<i32>} : memref<8x2x30xf32, #tpu.memory_space<vmem>>, vector<1x2x30xf32>,
    %c1_i32 = arith.constant 1 : i32
    %86 = arith.index_cast %c1_i32 : i32 to index
    %c0_40 = arith.constant 0 : index
    %c0_41 = arith.constant 0 : index
    %87 = vector.load %arg0[%86, %c0_40, %c0_41] : memref<8x2x30xf32, #tpu.memory_space<vmem>>, vector<1x2x30xf32>
    %88 = vector.shape_cast %87 : vector<1x2x30xf32> to vector<2x30xf32>
    %cst_42 = arith.constant dense<0.000000e+00> : vector<2x30xf32>
    %89 = tpu.matmul %35, %0, %cst_42 {dimension_numbers = #tpu.dot_dimension_numbers<[1], [0], [0], [1], [0, 0, 1, 1], [], []>} : vector<2x30xf32>, vector<30x30xf32>, vector<2x30xf32> -> vector<2x30xf32>
    %90 = arith.addf %88, %89 : vector<2x30xf32>
    %91 = arith.addf %90, %7 : vector<2x30xf32>
    %92 = arith.negf %91 : vector<2x30xf32>
    %93 = math.exp %92 : vector<2x30xf32>
    %cst_43 = arith.constant 1.000000e+00 : f32
    %94 = vector.broadcast %cst_43 : f32 to vector<2x30xf32>
    %95 = arith.addf %94, %93 : vector<2x30xf32>
    %96 = arith.divf %94, %95 : vector<2x30xf32>
    %cst_44 = arith.constant 1.000000e+00 : f32
    %97 = vector.broadcast %cst_44 : f32 to vector<2x30xf32>
    %98 = arith.addf %97, %96 : vector<2x30xf32>
    %cst_45 = arith.constant 1.000000e+00 : f32
    %cst_46 = arith.constant 1.000000e+01 : f32
    %99 = vector.broadcast %cst_45 : f32 to vector<2x30xf32>
    %100 = arith.maximumf %99, %98 : vector<2x30xf32>
    %101 = vector.broadcast %cst_46 : f32 to vector<2x30xf32>
    %102 = arith.minimumf %101, %100 : vector<2x30xf32>
    %103 = arith.mulf %96, %91 : vector<2x30xf32>
    %104 = arith.mulf %35, %102 : vector<2x30xf32>
    %105 = arith.subf %103, %104 : vector<2x30xf32>
    %106 = arith.addf %35, %105 : vector<2x30xf32>
    %cst_47 = arith.constant dense<0.000000e+00> : vector<2x30xf32>
    %107 = tpu.matmul %106, %1, %cst_47 {dimension_numbers = #tpu.dot_dimension_numbers<[1], [0], [0], [1], [0, 0, 1, 1], [], []>} : vector<2x30xf32>, vector<30x30xf32>, vector<2x30xf32> -> vector<2x30xf32>
    %cst_48 = arith.constant dense<0.000000e+00> : vector<2x30xf32>
    %108 = tpu.matmul %54, %2, %cst_48 {dimension_numbers = #tpu.dot_dimension_numbers<[1], [0], [0], [1], [0, 0, 1, 1], [], []>} : vector<2x30xf32>, vector<30x30xf32>, vector<2x30xf32> -> vector<2x30xf32>
    %109 = arith.addf %107, %108 : vector<2x30xf32>
    %110 = arith.addf %109, %10 : vector<2x30xf32>
    %111 = arith.negf %110 : vector<2x30xf32>
    %112 = math.exp %111 : vector<2x30xf32>
    %cst_49 = arith.constant 1.000000e+00 : f32
    %113 = vector.broadcast %cst_49 : f32 to vector<2x30xf32>
    %114 = arith.addf %113, %112 : vector<2x30xf32>
    %115 = arith.divf %113, %114 : vector<2x30xf32>
    %cst_50 = arith.constant 1.000000e+00 : f32
    %116 = vector.broadcast %cst_50 : f32 to vector<2x30xf32>
    %117 = arith.addf %116, %115 : vector<2x30xf32>
    %cst_51 = arith.constant 1.000000e+00 : f32
    %cst_52 = arith.constant 1.000000e+01 : f32
    %118 = vector.broadcast %cst_51 : f32 to vector<2x30xf32>
    %119 = arith.maximumf %118, %117 : vector<2x30xf32>
    %120 = vector.broadcast %cst_52 : f32 to vector<2x30xf32>
    %121 = arith.minimumf %120, %119 : vector<2x30xf32>
    %122 = arith.mulf %115, %110 : vector<2x30xf32>
    %123 = arith.mulf %54, %121 : vector<2x30xf32>
    %124 = arith.subf %122, %123 : vector<2x30xf32>
    %125 = arith.addf %54, %124 : vector<2x30xf32>
    %cst_53 = arith.constant dense<0.000000e+00> : vector<2x30xf32>
    %126 = tpu.matmul %125, %3, %cst_53 {dimension_numbers = #tpu.dot_dimension_numbers<[1], [0], [0], [1], [0, 0, 1, 1], [], []>} : vector<2x30xf32>, vector<30x30xf32>, vector<2x30xf32> -> vector<2x30xf32>
    %cst_54 = arith.constant dense<0.000000e+00> : vector<2x30xf32>
    %127 = tpu.matmul %73, %4, %cst_54 {dimension_numbers = #tpu.dot_dimension_numbers<[1], [0], [0], [1], [0, 0, 1, 1], [], []>} : vector<2x30xf32>, vector<30x30xf32>, vector<2x30xf32> -> vector<2x30xf32>
    %128 = arith.addf %126, %127 : vector<2x30xf32>
    %129 = arith.addf %128, %13 : vector<2x30xf32>
    %130 = arith.negf %129 : vector<2x30xf32>
    %131 = math.exp %130 : vector<2x30xf32>
    %cst_55 = arith.constant 1.000000e+00 : f32
    %132 = vector.broadcast %cst_55 : f32 to vector<2x30xf32>
    %133 = arith.addf %132, %131 : vector<2x30xf32>
    %134 = arith.divf %132, %133 : vector<2x30xf32>
    %cst_56 = arith.constant 1.000000e+00 : f32
    %135 = vector.broadcast %cst_56 : f32 to vector<2x30xf32>
    %136 = arith.addf %135, %134 : vector<2x30xf32>
    %cst_57 = arith.constant 1.000000e+00 : f32
    %cst_58 = arith.constant 1.000000e+01 : f32
    %137 = vector.broadcast %cst_57 : f32 to vector<2x30xf32>
    %138 = arith.maximumf %137, %136 : vector<2x30xf32>
    %139 = vector.broadcast %cst_58 : f32 to vector<2x30xf32>
    %140 = arith.minimumf %139, %138 : vector<2x30xf32>
    %141 = arith.mulf %134, %129 : vector<2x30xf32>
    %142 = arith.mulf %73, %140 : vector<2x30xf32>
    %143 = arith.subf %141, %142 : vector<2x30xf32>
    %144 = arith.addf %73, %143 : vector<2x30xf32>
    %145 = arith.index_cast %c1_i32 : i32 to index
    %c0_59 = arith.constant 0 : index
    %c0_60 = arith.constant 0 : index
    %146 = vector.load %arg12[%145, %c0_59, %c0_60] : memref<8x2x30xf32, #tpu.memory_space<vmem>>, vector<1x2x30xf32>
    %147 = vector.shape_cast %146 : vector<1x2x30xf32> to vector<2x30xf32>
    %148 = vector.shape_cast %105 : vector<2x30xf32> to vector<1x2x30xf32>
    tpu.vector_store %arg12[%145, %c0_59, %c0_60], %148 {strides = array<i32>} : memref<8x2x30xf32, #tpu.memory_space<vmem>>, vector<1x2x30xf32>,
    %149 = arith.index_cast %c1_i32 : i32 to index
    %c0_61 = arith.constant 0 : index
    %c0_62 = arith.constant 0 : index
    %150 = vector.load %arg13[%149, %c0_61, %c0_62] : memref<8x2x30xf32, #tpu.memory_space<vmem>>, vector<1x2x30xf32>
    %151 = vector.shape_cast %150 : vector<1x2x30xf32> to vector<2x30xf32>
    %152 = vector.shape_cast %124 : vector<2x30xf32> to vector<1x2x30xf32>
    tpu.vector_store %arg13[%149, %c0_61, %c0_62], %152 {strides = array<i32>} : memref<8x2x30xf32, #tpu.memory_space<vmem>>, vector<1x2x30xf32>,
    %153 = arith.index_cast %c1_i32 : i32 to index
    %c0_63 = arith.constant 0 : index
    %c0_64 = arith.constant 0 : index
    %154 = vector.load %arg14[%153, %c0_63, %c0_64] : memref<8x2x30xf32, #tpu.memory_space<vmem>>, vector<1x2x30xf32>
    %155 = vector.shape_cast %154 : vector<1x2x30xf32> to vector<2x30xf32>
    %156 = vector.shape_cast %143 : vector<2x30xf32> to vector<1x2x30xf32>
    tpu.vector_store %arg14[%153, %c0_63, %c0_64], %156 {strides = array<i32>} : memref<8x2x30xf32, #tpu.memory_space<vmem>>, vector<1x2x30xf32>,
    %c2_i32 = arith.constant 2 : i32
    %157 = arith.index_cast %c2_i32 : i32 to index
    %c0_65 = arith.constant 0 : index
    %c0_66 = arith.constant 0 : index
    %158 = vector.load %arg0[%157, %c0_65, %c0_66] : memref<8x2x30xf32, #tpu.memory_space<vmem>>, vector<1x2x30xf32>
    %159 = vector.shape_cast %158 : vector<1x2x30xf32> to vector<2x30xf32>
    %cst_67 = arith.constant dense<0.000000e+00> : vector<2x30xf32>
    %160 = tpu.matmul %106, %0, %cst_67 {dimension_numbers = #tpu.dot_dimension_numbers<[1], [0], [0], [1], [0, 0, 1, 1], [], []>} : vector<2x30xf32>, vector<30x30xf32>, vector<2x30xf32> -> vector<2x30xf32>
    %161 = arith.addf %159, %160 : vector<2x30xf32>
    %162 = arith.addf %161, %7 : vector<2x30xf32>
    %163 = arith.negf %162 : vector<2x30xf32>
    %164 = math.exp %163 : vector<2x30xf32>
    %cst_68 = arith.constant 1.000000e+00 : f32
    %165 = vector.broadcast %cst_68 : f32 to vector<2x30xf32>
    %166 = arith.addf %165, %164 : vector<2x30xf32>
    %167 = arith.divf %165, %166 : vector<2x30xf32>
    %cst_69 = arith.constant 1.000000e+00 : f32
    %168 = vector.broadcast %cst_69 : f32 to vector<2x30xf32>
    %169 = arith.addf %168, %167 : vector<2x30xf32>
    %cst_70 = arith.constant 1.000000e+00 : f32
    %cst_71 = arith.constant 1.000000e+01 : f32
    %170 = vector.broadcast %cst_70 : f32 to vector<2x30xf32>
    %171 = arith.maximumf %170, %169 : vector<2x30xf32>
    %172 = vector.broadcast %cst_71 : f32 to vector<2x30xf32>
    %173 = arith.minimumf %172, %171 : vector<2x30xf32>
    %174 = arith.mulf %167, %162 : vector<2x30xf32>
    %175 = arith.mulf %106, %173 : vector<2x30xf32>
    %176 = arith.subf %174, %175 : vector<2x30xf32>
    %177 = arith.addf %106, %176 : vector<2x30xf32>
    %cst_72 = arith.constant dense<0.000000e+00> : vector<2x30xf32>
    %178 = tpu.matmul %177, %1, %cst_72 {dimension_numbers = #tpu.dot_dimension_numbers<[1], [0], [0], [1], [0, 0, 1, 1], [], []>} : vector<2x30xf32>, vector<30x30xf32>, vector<2x30xf32> -> vector<2x30xf32>
    %cst_73 = arith.constant dense<0.000000e+00> : vector<2x30xf32>
    %179 = tpu.matmul %125, %2, %cst_73 {dimension_numbers = #tpu.dot_dimension_numbers<[1], [0], [0], [1], [0, 0, 1, 1], [], []>} : vector<2x30xf32>, vector<30x30xf32>, vector<2x30xf32> -> vector<2x30xf32>
    %180 = arith.addf %178, %179 : vector<2x30xf32>
    %181 = arith.addf %180, %10 : vector<2x30xf32>
    %182 = arith.negf %181 : vector<2x30xf32>
    %183 = math.exp %182 : vector<2x30xf32>
    %cst_74 = arith.constant 1.000000e+00 : f32
    %184 = vector.broadcast %cst_74 : f32 to vector<2x30xf32>
    %185 = arith.addf %184, %183 : vector<2x30xf32>
    %186 = arith.divf %184, %185 : vector<2x30xf32>
    %cst_75 = arith.constant 1.000000e+00 : f32
    %187 = vector.broadcast %cst_75 : f32 to vector<2x30xf32>
    %188 = arith.addf %187, %186 : vector<2x30xf32>
    %cst_76 = arith.constant 1.000000e+00 : f32
    %cst_77 = arith.constant 1.000000e+01 : f32
    %189 = vector.broadcast %cst_76 : f32 to vector<2x30xf32>
    %190 = arith.maximumf %189, %188 : vector<2x30xf32>
    %191 = vector.broadcast %cst_77 : f32 to vector<2x30xf32>
    %192 = arith.minimumf %191, %190 : vector<2x30xf32>
    %193 = arith.mulf %186, %181 : vector<2x30xf32>
    %194 = arith.mulf %125, %192 : vector<2x30xf32>
    %195 = arith.subf %193, %194 : vector<2x30xf32>
    %196 = arith.addf %125, %195 : vector<2x30xf32>
    %cst_78 = arith.constant dense<0.000000e+00> : vector<2x30xf32>
    %197 = tpu.matmul %196, %3, %cst_78 {dimension_numbers = #tpu.dot_dimension_numbers<[1], [0], [0], [1], [0, 0, 1, 1], [], []>} : vector<2x30xf32>, vector<30x30xf32>, vector<2x30xf32> -> vector<2x30xf32>
    %cst_79 = arith.constant dense<0.000000e+00> : vector<2x30xf32>
    %198 = tpu.matmul %144, %4, %cst_79 {dimension_numbers = #tpu.dot_dimension_numbers<[1], [0], [0], [1], [0, 0, 1, 1], [], []>} : vector<2x30xf32>, vector<30x30xf32>, vector<2x30xf32> -> vector<2x30xf32>
    %199 = arith.addf %197, %198 : vector<2x30xf32>
    %200 = arith.addf %199, %13 : vector<2x30xf32>
    %201 = arith.negf %200 : vector<2x30xf32>
    %202 = math.exp %201 : vector<2x30xf32>
    %cst_80 = arith.constant 1.000000e+00 : f32
    %203 = vector.broadcast %cst_80 : f32 to vector<2x30xf32>
    %204 = arith.addf %203, %202 : vector<2x30xf32>
    %205 = arith.divf %203, %204 : vector<2x30xf32>
    %cst_81 = arith.constant 1.000000e+00 : f32
    %206 = vector.broadcast %cst_81 : f32 to vector<2x30xf32>
    %207 = arith.addf %206, %205 : vector<2x30xf32>
    %cst_82 = arith.constant 1.000000e+00 : f32
    %cst_83 = arith.constant 1.000000e+01 : f32
    %208 = vector.broadcast %cst_82 : f32 to vector<2x30xf32>
    %209 = arith.maximumf %208, %207 : vector<2x30xf32>
    %210 = vector.broadcast %cst_83 : f32 to vector<2x30xf32>
    %211 = arith.minimumf %210, %209 : vector<2x30xf32>
    %212 = arith.mulf %205, %200 : vector<2x30xf32>
    %213 = arith.mulf %144, %211 : vector<2x30xf32>
    %214 = arith.subf %212, %213 : vector<2x30xf32>
    %215 = arith.addf %144, %214 : vector<2x30xf32>
    %216 = arith.index_cast %c2_i32 : i32 to index
    %c0_84 = arith.constant 0 : index
    %c0_85 = arith.constant 0 : index
    %217 = vector.load %arg12[%216, %c0_84, %c0_85] : memref<8x2x30xf32, #tpu.memory_space<vmem>>, vector<1x2x30xf32>
    %218 = vector.shape_cast %217 : vector<1x2x30xf32> to vector<2x30xf32>
    %219 = vector.shape_cast %176 : vector<2x30xf32> to vector<1x2x30xf32>
    tpu.vector_store %arg12[%216, %c0_84, %c0_85], %219 {strides = array<i32>} : memref<8x2x30xf32, #tpu.memory_space<vmem>>, vector<1x2x30xf32>,
    %220 = arith.index_cast %c2_i32 : i32 to index
    %c0_86 = arith.constant 0 : index
    %c0_87 = arith.constant 0 : index
    %221 = vector.load %arg13[%220, %c0_86, %c0_87] : memref<8x2x30xf32, #tpu.memory_space<vmem>>, vector<1x2x30xf32>
    %222 = vector.shape_cast %221 : vector<1x2x30xf32> to vector<2x30xf32>
    %223 = vector.shape_cast %195 : vector<2x30xf32> to vector<1x2x30xf32>
    tpu.vector_store %arg13[%220, %c0_86, %c0_87], %223 {strides = array<i32>} : memref<8x2x30xf32, #tpu.memory_space<vmem>>, vector<1x2x30xf32>,
    %224 = arith.index_cast %c2_i32 : i32 to index
    %c0_88 = arith.constant 0 : index
    %c0_89 = arith.constant 0 : index
    %225 = vector.load %arg14[%224, %c0_88, %c0_89] : memref<8x2x30xf32, #tpu.memory_space<vmem>>, vector<1x2x30xf32>
    %226 = vector.shape_cast %225 : vector<1x2x30xf32> to vector<2x30xf32>
    %227 = vector.shape_cast %214 : vector<2x30xf32> to vector<1x2x30xf32>
    tpu.vector_store %arg14[%224, %c0_88, %c0_89], %227 {strides = array<i32>} : memref<8x2x30xf32, #tpu.memory_space<vmem>>, vector<1x2x30xf32>,
    %c3_i32 = arith.constant 3 : i32
    %228 = arith.index_cast %c3_i32 : i32 to index
    %c0_90 = arith.constant 0 : index
    %c0_91 = arith.constant 0 : index
    %229 = vector.load %arg0[%228, %c0_90, %c0_91] : memref<8x2x30xf32, #tpu.memory_space<vmem>>, vector<1x2x30xf32>
    %230 = vector.shape_cast %229 : vector<1x2x30xf32> to vector<2x30xf32>
    %cst_92 = arith.constant dense<0.000000e+00> : vector<2x30xf32>
    %231 = tpu.matmul %177, %0, %cst_92 {dimension_numbers = #tpu.dot_dimension_numbers<[1], [0], [0], [1], [0, 0, 1, 1], [], []>} : vector<2x30xf32>, vector<30x30xf32>, vector<2x30xf32> -> vector<2x30xf32>
    %232 = arith.addf %230, %231 : vector<2x30xf32>
    %233 = arith.addf %232, %7 : vector<2x30xf32>
    %234 = arith.negf %233 : vector<2x30xf32>
    %235 = math.exp %234 : vector<2x30xf32>
    %cst_93 = arith.constant 1.000000e+00 : f32
    %236 = vector.broadcast %cst_93 : f32 to vector<2x30xf32>
    %237 = arith.addf %236, %235 : vector<2x30xf32>
    %238 = arith.divf %236, %237 : vector<2x30xf32>
    %cst_94 = arith.constant 1.000000e+00 : f32
    %239 = vector.broadcast %cst_94 : f32 to vector<2x30xf32>
    %240 = arith.addf %239, %238 : vector<2x30xf32>
    %cst_95 = arith.constant 1.000000e+00 : f32
    %cst_96 = arith.constant 1.000000e+01 : f32
    %241 = vector.broadcast %cst_95 : f32 to vector<2x30xf32>
    %242 = arith.maximumf %241, %240 : vector<2x30xf32>
    %243 = vector.broadcast %cst_96 : f32 to vector<2x30xf32>
    %244 = arith.minimumf %243, %242 : vector<2x30xf32>
    %245 = arith.mulf %238, %233 : vector<2x30xf32>
    %246 = arith.mulf %177, %244 : vector<2x30xf32>
    %247 = arith.subf %245, %246 : vector<2x30xf32>
    %248 = arith.addf %177, %247 : vector<2x30xf32>
    %cst_97 = arith.constant dense<0.000000e+00> : vector<2x30xf32>
    %249 = tpu.matmul %248, %1, %cst_97 {dimension_numbers = #tpu.dot_dimension_numbers<[1], [0], [0], [1], [0, 0, 1, 1], [], []>} : vector<2x30xf32>, vector<30x30xf32>, vector<2x30xf32> -> vector<2x30xf32>
    %cst_98 = arith.constant dense<0.000000e+00> : vector<2x30xf32>
    %250 = tpu.matmul %196, %2, %cst_98 {dimension_numbers = #tpu.dot_dimension_numbers<[1], [0], [0], [1], [0, 0, 1, 1], [], []>} : vector<2x30xf32>, vector<30x30xf32>, vector<2x30xf32> -> vector<2x30xf32>
    %251 = arith.addf %249, %250 : vector<2x30xf32>
    %252 = arith.addf %251, %10 : vector<2x30xf32>
    %253 = arith.negf %252 : vector<2x30xf32>
    %254 = math.exp %253 : vector<2x30xf32>
    %cst_99 = arith.constant 1.000000e+00 : f32
    %255 = vector.broadcast %cst_99 : f32 to vector<2x30xf32>
    %256 = arith.addf %255, %254 : vector<2x30xf32>
    %257 = arith.divf %255, %256 : vector<2x30xf32>
    %cst_100 = arith.constant 1.000000e+00 : f32
    %258 = vector.broadcast %cst_100 : f32 to vector<2x30xf32>
    %259 = arith.addf %258, %257 : vector<2x30xf32>
    %cst_101 = arith.constant 1.000000e+00 : f32
    %cst_102 = arith.constant 1.000000e+01 : f32
    %260 = vector.broadcast %cst_101 : f32 to vector<2x30xf32>
    %261 = arith.maximumf %260, %259 : vector<2x30xf32>
    %262 = vector.broadcast %cst_102 : f32 to vector<2x30xf32>
    %263 = arith.minimumf %262, %261 : vector<2x30xf32>
    %264 = arith.mulf %257, %252 : vector<2x30xf32>
    %265 = arith.mulf %196, %263 : vector<2x30xf32>
    %266 = arith.subf %264, %265 : vector<2x30xf32>
    %267 = arith.addf %196, %266 : vector<2x30xf32>
    %cst_103 = arith.constant dense<0.000000e+00> : vector<2x30xf32>
    %268 = tpu.matmul %267, %3, %cst_103 {dimension_numbers = #tpu.dot_dimension_numbers<[1], [0], [0], [1], [0, 0, 1, 1], [], []>} : vector<2x30xf32>, vector<30x30xf32>, vector<2x30xf32> -> vector<2x30xf32>
    %cst_104 = arith.constant dense<0.000000e+00> : vector<2x30xf32>
    %269 = tpu.matmul %215, %4, %cst_104 {dimension_numbers = #tpu.dot_dimension_numbers<[1], [0], [0], [1], [0, 0, 1, 1], [], []>} : vector<2x30xf32>, vector<30x30xf32>, vector<2x30xf32> -> vector<2x30xf32>
    %270 = arith.addf %268, %269 : vector<2x30xf32>
    %271 = arith.addf %270, %13 : vector<2x30xf32>
    %272 = arith.negf %271 : vector<2x30xf32>
    %273 = math.exp %272 : vector<2x30xf32>
    %cst_105 = arith.constant 1.000000e+00 : f32
    %274 = vector.broadcast %cst_105 : f32 to vector<2x30xf32>
    %275 = arith.addf %274, %273 : vector<2x30xf32>
    %276 = arith.divf %274, %275 : vector<2x30xf32>
    %cst_106 = arith.constant 1.000000e+00 : f32
    %277 = vector.broadcast %cst_106 : f32 to vector<2x30xf32>
    %278 = arith.addf %277, %276 : vector<2x30xf32>
    %cst_107 = arith.constant 1.000000e+00 : f32
    %cst_108 = arith.constant 1.000000e+01 : f32
    %279 = vector.broadcast %cst_107 : f32 to vector<2x30xf32>
    %280 = arith.maximumf %279, %278 : vector<2x30xf32>
    %281 = vector.broadcast %cst_108 : f32 to vector<2x30xf32>
    %282 = arith.minimumf %281, %280 : vector<2x30xf32>
    %283 = arith.mulf %276, %271 : vector<2x30xf32>
    %284 = arith.mulf %215, %282 : vector<2x30xf32>
    %285 = arith.subf %283, %284 : vector<2x30xf32>
    %286 = arith.addf %215, %285 : vector<2x30xf32>
    %287 = arith.index_cast %c3_i32 : i32 to index
    %c0_109 = arith.constant 0 : index
    %c0_110 = arith.constant 0 : index
    %288 = vector.load %arg12[%287, %c0_109, %c0_110] : memref<8x2x30xf32, #tpu.memory_space<vmem>>, vector<1x2x30xf32>
    %289 = vector.shape_cast %288 : vector<1x2x30xf32> to vector<2x30xf32>
    %290 = vector.shape_cast %247 : vector<2x30xf32> to vector<1x2x30xf32>
    tpu.vector_store %arg12[%287, %c0_109, %c0_110], %290 {strides = array<i32>} : memref<8x2x30xf32, #tpu.memory_space<vmem>>, vector<1x2x30xf32>,
    %291 = arith.index_cast %c3_i32 : i32 to index
    %c0_111 = arith.constant 0 : index
    %c0_112 = arith.constant 0 : index
    %292 = vector.load %arg13[%291, %c0_111, %c0_112] : memref<8x2x30xf32, #tpu.memory_space<vmem>>, vector<1x2x30xf32>
    %293 = vector.shape_cast %292 : vector<1x2x30xf32> to vector<2x30xf32>
    %294 = vector.shape_cast %266 : vector<2x30xf32> to vector<1x2x30xf32>
    tpu.vector_store %arg13[%291, %c0_111, %c0_112], %294 {strides = array<i32>} : memref<8x2x30xf32, #tpu.memory_space<vmem>>, vector<1x2x30xf32>,
    %295 = arith.index_cast %c3_i32 : i32 to index
    %c0_113 = arith.constant 0 : index
    %c0_114 = arith.constant 0 : index
    %296 = vector.load %arg14[%295, %c0_113, %c0_114] : memref<8x2x30xf32, #tpu.memory_space<vmem>>, vector<1x2x30xf32>
    %297 = vector.shape_cast %296 : vector<1x2x30xf32> to vector<2x30xf32>
    %298 = vector.shape_cast %285 : vector<2x30xf32> to vector<1x2x30xf32>
    tpu.vector_store %arg14[%295, %c0_113, %c0_114], %298 {strides = array<i32>} : memref<8x2x30xf32, #tpu.memory_space<vmem>>, vector<1x2x30xf32>,
    %c4_i32 = arith.constant 4 : i32
    %299 = arith.index_cast %c4_i32 : i32 to index
    %c0_115 = arith.constant 0 : index
    %c0_116 = arith.constant 0 : index
    %300 = vector.load %arg0[%299, %c0_115, %c0_116] : memref<8x2x30xf32, #tpu.memory_space<vmem>>, vector<1x2x30xf32>
    %301 = vector.shape_cast %300 : vector<1x2x30xf32> to vector<2x30xf32>
    %cst_117 = arith.constant dense<0.000000e+00> : vector<2x30xf32>
    %302 = tpu.matmul %248, %0, %cst_117 {dimension_numbers = #tpu.dot_dimension_numbers<[1], [0], [0], [1], [0, 0, 1, 1], [], []>} : vector<2x30xf32>, vector<30x30xf32>, vector<2x30xf32> -> vector<2x30xf32>
    %303 = arith.addf %301, %302 : vector<2x30xf32>
    %304 = arith.addf %303, %7 : vector<2x30xf32>
    %305 = arith.negf %304 : vector<2x30xf32>
    %306 = math.exp %305 : vector<2x30xf32>
    %cst_118 = arith.constant 1.000000e+00 : f32
    %307 = vector.broadcast %cst_118 : f32 to vector<2x30xf32>
    %308 = arith.addf %307, %306 : vector<2x30xf32>
    %309 = arith.divf %307, %308 : vector<2x30xf32>
    %cst_119 = arith.constant 1.000000e+00 : f32
    %310 = vector.broadcast %cst_119 : f32 to vector<2x30xf32>
    %311 = arith.addf %310, %309 : vector<2x30xf32>
    %cst_120 = arith.constant 1.000000e+00 : f32
    %cst_121 = arith.constant 1.000000e+01 : f32
    %312 = vector.broadcast %cst_120 : f32 to vector<2x30xf32>
    %313 = arith.maximumf %312, %311 : vector<2x30xf32>
    %314 = vector.broadcast %cst_121 : f32 to vector<2x30xf32>
    %315 = arith.minimumf %314, %313 : vector<2x30xf32>
    %316 = arith.mulf %309, %304 : vector<2x30xf32>
    %317 = arith.mulf %248, %315 : vector<2x30xf32>
    %318 = arith.subf %316, %317 : vector<2x30xf32>
    %319 = arith.addf %248, %318 : vector<2x30xf32>
    %cst_122 = arith.constant dense<0.000000e+00> : vector<2x30xf32>
    %320 = tpu.matmul %319, %1, %cst_122 {dimension_numbers = #tpu.dot_dimension_numbers<[1], [0], [0], [1], [0, 0, 1, 1], [], []>} : vector<2x30xf32>, vector<30x30xf32>, vector<2x30xf32> -> vector<2x30xf32>
    %cst_123 = arith.constant dense<0.000000e+00> : vector<2x30xf32>
    %321 = tpu.matmul %267, %2, %cst_123 {dimension_numbers = #tpu.dot_dimension_numbers<[1], [0], [0], [1], [0, 0, 1, 1], [], []>} : vector<2x30xf32>, vector<30x30xf32>, vector<2x30xf32> -> vector<2x30xf32>
    %322 = arith.addf %320, %321 : vector<2x30xf32>
    %323 = arith.addf %322, %10 : vector<2x30xf32>
    %324 = arith.negf %323 : vector<2x30xf32>
    %325 = math.exp %324 : vector<2x30xf32>
    %cst_124 = arith.constant 1.000000e+00 : f32
    %326 = vector.broadcast %cst_124 : f32 to vector<2x30xf32>
    %327 = arith.addf %326, %325 : vector<2x30xf32>
    %328 = arith.divf %326, %327 : vector<2x30xf32>
    %cst_125 = arith.constant 1.000000e+00 : f32
    %329 = vector.broadcast %cst_125 : f32 to vector<2x30xf32>
    %330 = arith.addf %329, %328 : vector<2x30xf32>
    %cst_126 = arith.constant 1.000000e+00 : f32
    %cst_127 = arith.constant 1.000000e+01 : f32
    %331 = vector.broadcast %cst_126 : f32 to vector<2x30xf32>
    %332 = arith.maximumf %331, %330 : vector<2x30xf32>
    %333 = vector.broadcast %cst_127 : f32 to vector<2x30xf32>
    %334 = arith.minimumf %333, %332 : vector<2x30xf32>
    %335 = arith.mulf %328, %323 : vector<2x30xf32>
    %336 = arith.mulf %267, %334 : vector<2x30xf32>
    %337 = arith.subf %335, %336 : vector<2x30xf32>
    %338 = arith.addf %267, %337 : vector<2x30xf32>
    %cst_128 = arith.constant dense<0.000000e+00> : vector<2x30xf32>
    %339 = tpu.matmul %338, %3, %cst_128 {dimension_numbers = #tpu.dot_dimension_numbers<[1], [0], [0], [1], [0, 0, 1, 1], [], []>} : vector<2x30xf32>, vector<30x30xf32>, vector<2x30xf32> -> vector<2x30xf32>
    %cst_129 = arith.constant dense<0.000000e+00> : vector<2x30xf32>
    %340 = tpu.matmul %286, %4, %cst_129 {dimension_numbers = #tpu.dot_dimension_numbers<[1], [0], [0], [1], [0, 0, 1, 1], [], []>} : vector<2x30xf32>, vector<30x30xf32>, vector<2x30xf32> -> vector<2x30xf32>
    %341 = arith.addf %339, %340 : vector<2x30xf32>
    %342 = arith.addf %341, %13 : vector<2x30xf32>
    %343 = arith.negf %342 : vector<2x30xf32>
    %344 = math.exp %343 : vector<2x30xf32>
    %cst_130 = arith.constant 1.000000e+00 : f32
    %345 = vector.broadcast %cst_130 : f32 to vector<2x30xf32>
    %346 = arith.addf %345, %344 : vector<2x30xf32>
    %347 = arith.divf %345, %346 : vector<2x30xf32>
    %cst_131 = arith.constant 1.000000e+00 : f32
    %348 = vector.broadcast %cst_131 : f32 to vector<2x30xf32>
    %349 = arith.addf %348, %347 : vector<2x30xf32>
    %cst_132 = arith.constant 1.000000e+00 : f32
    %cst_133 = arith.constant 1.000000e+01 : f32
    %350 = vector.broadcast %cst_132 : f32 to vector<2x30xf32>
    %351 = arith.maximumf %350, %349 : vector<2x30xf32>
    %352 = vector.broadcast %cst_133 : f32 to vector<2x30xf32>
    %353 = arith.minimumf %352, %351 : vector<2x30xf32>
    %354 = arith.mulf %347, %342 : vector<2x30xf32>
    %355 = arith.mulf %286, %353 : vector<2x30xf32>
    %356 = arith.subf %354, %355 : vector<2x30xf32>
    %357 = arith.addf %286, %356 : vector<2x30xf32>
    %358 = arith.index_cast %c4_i32 : i32 to index
    %c0_134 = arith.constant 0 : index
    %c0_135 = arith.constant 0 : index
    %359 = vector.load %arg12[%358, %c0_134, %c0_135] : memref<8x2x30xf32, #tpu.memory_space<vmem>>, vector<1x2x30xf32>
    %360 = vector.shape_cast %359 : vector<1x2x30xf32> to vector<2x30xf32>
    %361 = vector.shape_cast %318 : vector<2x30xf32> to vector<1x2x30xf32>
    tpu.vector_store %arg12[%358, %c0_134, %c0_135], %361 {strides = array<i32>} : memref<8x2x30xf32, #tpu.memory_space<vmem>>, vector<1x2x30xf32>,
    %362 = arith.index_cast %c4_i32 : i32 to index
    %c0_136 = arith.constant 0 : index
    %c0_137 = arith.constant 0 : index
    %363 = vector.load %arg13[%362, %c0_136, %c0_137] : memref<8x2x30xf32, #tpu.memory_space<vmem>>, vector<1x2x30xf32>
    %364 = vector.shape_cast %363 : vector<1x2x30xf32> to vector<2x30xf32>
    %365 = vector.shape_cast %337 : vector<2x30xf32> to vector<1x2x30xf32>
    tpu.vector_store %arg13[%362, %c0_136, %c0_137], %365 {strides = array<i32>} : memref<8x2x30xf32, #tpu.memory_space<vmem>>, vector<1x2x30xf32>,
    %366 = arith.index_cast %c4_i32 : i32 to index
    %c0_138 = arith.constant 0 : index
    %c0_139 = arith.constant 0 : index
    %367 = vector.load %arg14[%366, %c0_138, %c0_139] : memref<8x2x30xf32, #tpu.memory_space<vmem>>, vector<1x2x30xf32>
    %368 = vector.shape_cast %367 : vector<1x2x30xf32> to vector<2x30xf32>
    %369 = vector.shape_cast %356 : vector<2x30xf32> to vector<1x2x30xf32>
    tpu.vector_store %arg14[%366, %c0_138, %c0_139], %369 {strides = array<i32>} : memref<8x2x30xf32, #tpu.memory_space<vmem>>, vector<1x2x30xf32>,
    %c5_i32 = arith.constant 5 : i32
    %370 = arith.index_cast %c5_i32 : i32 to index
    %c0_140 = arith.constant 0 : index
    %c0_141 = arith.constant 0 : index
    %371 = vector.load %arg0[%370, %c0_140, %c0_141] : memref<8x2x30xf32, #tpu.memory_space<vmem>>, vector<1x2x30xf32>
    %372 = vector.shape_cast %371 : vector<1x2x30xf32> to vector<2x30xf32>
    %cst_142 = arith.constant dense<0.000000e+00> : vector<2x30xf32>
    %373 = tpu.matmul %319, %0, %cst_142 {dimension_numbers = #tpu.dot_dimension_numbers<[1], [0], [0], [1], [0, 0, 1, 1], [], []>} : vector<2x30xf32>, vector<30x30xf32>, vector<2x30xf32> -> vector<2x30xf32>
    %374 = arith.addf %372, %373 : vector<2x30xf32>
    %375 = arith.addf %374, %7 : vector<2x30xf32>
    %376 = arith.negf %375 : vector<2x30xf32>
    %377 = math.exp %376 : vector<2x30xf32>
    %cst_143 = arith.constant 1.000000e+00 : f32
    %378 = vector.broadcast %cst_143 : f32 to vector<2x30xf32>
    %379 = arith.addf %378, %377 : vector<2x30xf32>
    %380 = arith.divf %378, %379 : vector<2x30xf32>
    %cst_144 = arith.constant 1.000000e+00 : f32
    %381 = vector.broadcast %cst_144 : f32 to vector<2x30xf32>
    %382 = arith.addf %381, %380 : vector<2x30xf32>
    %cst_145 = arith.constant 1.000000e+00 : f32
    %cst_146 = arith.constant 1.000000e+01 : f32
    %383 = vector.broadcast %cst_145 : f32 to vector<2x30xf32>
    %384 = arith.maximumf %383, %382 : vector<2x30xf32>
    %385 = vector.broadcast %cst_146 : f32 to vector<2x30xf32>
    %386 = arith.minimumf %385, %384 : vector<2x30xf32>
    %387 = arith.mulf %380, %375 : vector<2x30xf32>
    %388 = arith.mulf %319, %386 : vector<2x30xf32>
    %389 = arith.subf %387, %388 : vector<2x30xf32>
    %390 = arith.addf %319, %389 : vector<2x30xf32>
    %cst_147 = arith.constant dense<0.000000e+00> : vector<2x30xf32>
    %391 = tpu.matmul %390, %1, %cst_147 {dimension_numbers = #tpu.dot_dimension_numbers<[1], [0], [0], [1], [0, 0, 1, 1], [], []>} : vector<2x30xf32>, vector<30x30xf32>, vector<2x30xf32> -> vector<2x30xf32>
    %cst_148 = arith.constant dense<0.000000e+00> : vector<2x30xf32>
    %392 = tpu.matmul %338, %2, %cst_148 {dimension_numbers = #tpu.dot_dimension_numbers<[1], [0], [0], [1], [0, 0, 1, 1], [], []>} : vector<2x30xf32>, vector<30x30xf32>, vector<2x30xf32> -> vector<2x30xf32>
    %393 = arith.addf %391, %392 : vector<2x30xf32>
    %394 = arith.addf %393, %10 : vector<2x30xf32>
    %395 = arith.negf %394 : vector<2x30xf32>
    %396 = math.exp %395 : vector<2x30xf32>
    %cst_149 = arith.constant 1.000000e+00 : f32
    %397 = vector.broadcast %cst_149 : f32 to vector<2x30xf32>
    %398 = arith.addf %397, %396 : vector<2x30xf32>
    %399 = arith.divf %397, %398 : vector<2x30xf32>
    %cst_150 = arith.constant 1.000000e+00 : f32
    %400 = vector.broadcast %cst_150 : f32 to vector<2x30xf32>
    %401 = arith.addf %400, %399 : vector<2x30xf32>
    %cst_151 = arith.constant 1.000000e+00 : f32
    %cst_152 = arith.constant 1.000000e+01 : f32
    %402 = vector.broadcast %cst_151 : f32 to vector<2x30xf32>
    %403 = arith.maximumf %402, %401 : vector<2x30xf32>
    %404 = vector.broadcast %cst_152 : f32 to vector<2x30xf32>
    %405 = arith.minimumf %404, %403 : vector<2x30xf32>
    %406 = arith.mulf %399, %394 : vector<2x30xf32>
    %407 = arith.mulf %338, %405 : vector<2x30xf32>
    %408 = arith.subf %406, %407 : vector<2x30xf32>
    %409 = arith.addf %338, %408 : vector<2x30xf32>
    %cst_153 = arith.constant dense<0.000000e+00> : vector<2x30xf32>
    %410 = tpu.matmul %409, %3, %cst_153 {dimension_numbers = #tpu.dot_dimension_numbers<[1], [0], [0], [1], [0, 0, 1, 1], [], []>} : vector<2x30xf32>, vector<30x30xf32>, vector<2x30xf32> -> vector<2x30xf32>
    %cst_154 = arith.constant dense<0.000000e+00> : vector<2x30xf32>
    %411 = tpu.matmul %357, %4, %cst_154 {dimension_numbers = #tpu.dot_dimension_numbers<[1], [0], [0], [1], [0, 0, 1, 1], [], []>} : vector<2x30xf32>, vector<30x30xf32>, vector<2x30xf32> -> vector<2x30xf32>
    %412 = arith.addf %410, %411 : vector<2x30xf32>
    %413 = arith.addf %412, %13 : vector<2x30xf32>
    %414 = arith.negf %413 : vector<2x30xf32>
    %415 = math.exp %414 : vector<2x30xf32>
    %cst_155 = arith.constant 1.000000e+00 : f32
    %416 = vector.broadcast %cst_155 : f32 to vector<2x30xf32>
    %417 = arith.addf %416, %415 : vector<2x30xf32>
    %418 = arith.divf %416, %417 : vector<2x30xf32>
    %cst_156 = arith.constant 1.000000e+00 : f32
    %419 = vector.broadcast %cst_156 : f32 to vector<2x30xf32>
    %420 = arith.addf %419, %418 : vector<2x30xf32>
    %cst_157 = arith.constant 1.000000e+00 : f32
    %cst_158 = arith.constant 1.000000e+01 : f32
    %421 = vector.broadcast %cst_157 : f32 to vector<2x30xf32>
    %422 = arith.maximumf %421, %420 : vector<2x30xf32>
    %423 = vector.broadcast %cst_158 : f32 to vector<2x30xf32>
    %424 = arith.minimumf %423, %422 : vector<2x30xf32>
    %425 = arith.mulf %418, %413 : vector<2x30xf32>
    %426 = arith.mulf %357, %424 : vector<2x30xf32>
    %427 = arith.subf %425, %426 : vector<2x30xf32>
    %428 = arith.addf %357, %427 : vector<2x30xf32>
    %429 = arith.index_cast %c5_i32 : i32 to index
    %c0_159 = arith.constant 0 : index
    %c0_160 = arith.constant 0 : index
    %430 = vector.load %arg12[%429, %c0_159, %c0_160] : memref<8x2x30xf32, #tpu.memory_space<vmem>>, vector<1x2x30xf32>
    %431 = vector.shape_cast %430 : vector<1x2x30xf32> to vector<2x30xf32>
    %432 = vector.shape_cast %389 : vector<2x30xf32> to vector<1x2x30xf32>
    tpu.vector_store %arg12[%429, %c0_159, %c0_160], %432 {strides = array<i32>} : memref<8x2x30xf32, #tpu.memory_space<vmem>>, vector<1x2x30xf32>,
    %433 = arith.index_cast %c5_i32 : i32 to index
    %c0_161 = arith.constant 0 : index
    %c0_162 = arith.constant 0 : index
    %434 = vector.load %arg13[%433, %c0_161, %c0_162] : memref<8x2x30xf32, #tpu.memory_space<vmem>>, vector<1x2x30xf32>
    %435 = vector.shape_cast %434 : vector<1x2x30xf32> to vector<2x30xf32>
    %436 = vector.shape_cast %408 : vector<2x30xf32> to vector<1x2x30xf32>
    tpu.vector_store %arg13[%433, %c0_161, %c0_162], %436 {strides = array<i32>} : memref<8x2x30xf32, #tpu.memory_space<vmem>>, vector<1x2x30xf32>,
    %437 = arith.index_cast %c5_i32 : i32 to index
    %c0_163 = arith.constant 0 : index
    %c0_164 = arith.constant 0 : index
    %438 = vector.load %arg14[%437, %c0_163, %c0_164] : memref<8x2x30xf32, #tpu.memory_space<vmem>>, vector<1x2x30xf32>
    %439 = vector.shape_cast %438 : vector<1x2x30xf32> to vector<2x30xf32>
    %440 = vector.shape_cast %427 : vector<2x30xf32> to vector<1x2x30xf32>
    tpu.vector_store %arg14[%437, %c0_163, %c0_164], %440 {strides = array<i32>} : memref<8x2x30xf32, #tpu.memory_space<vmem>>, vector<1x2x30xf32>,
    %c6_i32 = arith.constant 6 : i32
    %441 = arith.index_cast %c6_i32 : i32 to index
    %c0_165 = arith.constant 0 : index
    %c0_166 = arith.constant 0 : index
    %442 = vector.load %arg0[%441, %c0_165, %c0_166] : memref<8x2x30xf32, #tpu.memory_space<vmem>>, vector<1x2x30xf32>
    %443 = vector.shape_cast %442 : vector<1x2x30xf32> to vector<2x30xf32>
    %cst_167 = arith.constant dense<0.000000e+00> : vector<2x30xf32>
    %444 = tpu.matmul %390, %0, %cst_167 {dimension_numbers = #tpu.dot_dimension_numbers<[1], [0], [0], [1], [0, 0, 1, 1], [], []>} : vector<2x30xf32>, vector<30x30xf32>, vector<2x30xf32> -> vector<2x30xf32>
    %445 = arith.addf %443, %444 : vector<2x30xf32>
    %446 = arith.addf %445, %7 : vector<2x30xf32>
    %447 = arith.negf %446 : vector<2x30xf32>
    %448 = math.exp %447 : vector<2x30xf32>
    %cst_168 = arith.constant 1.000000e+00 : f32
    %449 = vector.broadcast %cst_168 : f32 to vector<2x30xf32>
    %450 = arith.addf %449, %448 : vector<2x30xf32>
    %451 = arith.divf %449, %450 : vector<2x30xf32>
    %cst_169 = arith.constant 1.000000e+00 : f32
    %452 = vector.broadcast %cst_169 : f32 to vector<2x30xf32>
    %453 = arith.addf %452, %451 : vector<2x30xf32>
    %cst_170 = arith.constant 1.000000e+00 : f32
    %cst_171 = arith.constant 1.000000e+01 : f32
    %454 = vector.broadcast %cst_170 : f32 to vector<2x30xf32>
    %455 = arith.maximumf %454, %453 : vector<2x30xf32>
    %456 = vector.broadcast %cst_171 : f32 to vector<2x30xf32>
    %457 = arith.minimumf %456, %455 : vector<2x30xf32>
    %458 = arith.mulf %451, %446 : vector<2x30xf32>
    %459 = arith.mulf %390, %457 : vector<2x30xf32>
    %460 = arith.subf %458, %459 : vector<2x30xf32>
    %461 = arith.addf %390, %460 : vector<2x30xf32>
    %cst_172 = arith.constant dense<0.000000e+00> : vector<2x30xf32>
    %462 = tpu.matmul %461, %1, %cst_172 {dimension_numbers = #tpu.dot_dimension_numbers<[1], [0], [0], [1], [0, 0, 1, 1], [], []>} : vector<2x30xf32>, vector<30x30xf32>, vector<2x30xf32> -> vector<2x30xf32>
    %cst_173 = arith.constant dense<0.000000e+00> : vector<2x30xf32>
    %463 = tpu.matmul %409, %2, %cst_173 {dimension_numbers = #tpu.dot_dimension_numbers<[1], [0], [0], [1], [0, 0, 1, 1], [], []>} : vector<2x30xf32>, vector<30x30xf32>, vector<2x30xf32> -> vector<2x30xf32>
    %464 = arith.addf %462, %463 : vector<2x30xf32>
    %465 = arith.addf %464, %10 : vector<2x30xf32>
    %466 = arith.negf %465 : vector<2x30xf32>
    %467 = math.exp %466 : vector<2x30xf32>
    %cst_174 = arith.constant 1.000000e+00 : f32
    %468 = vector.broadcast %cst_174 : f32 to vector<2x30xf32>
    %469 = arith.addf %468, %467 : vector<2x30xf32>
    %470 = arith.divf %468, %469 : vector<2x30xf32>
    %cst_175 = arith.constant 1.000000e+00 : f32
    %471 = vector.broadcast %cst_175 : f32 to vector<2x30xf32>
    %472 = arith.addf %471, %470 : vector<2x30xf32>
    %cst_176 = arith.constant 1.000000e+00 : f32
    %cst_177 = arith.constant 1.000000e+01 : f32
    %473 = vector.broadcast %cst_176 : f32 to vector<2x30xf32>
    %474 = arith.maximumf %473, %472 : vector<2x30xf32>
    %475 = vector.broadcast %cst_177 : f32 to vector<2x30xf32>
    %476 = arith.minimumf %475, %474 : vector<2x30xf32>
    %477 = arith.mulf %470, %465 : vector<2x30xf32>
    %478 = arith.mulf %409, %476 : vector<2x30xf32>
    %479 = arith.subf %477, %478 : vector<2x30xf32>
    %480 = arith.addf %409, %479 : vector<2x30xf32>
    %cst_178 = arith.constant dense<0.000000e+00> : vector<2x30xf32>
    %481 = tpu.matmul %480, %3, %cst_178 {dimension_numbers = #tpu.dot_dimension_numbers<[1], [0], [0], [1], [0, 0, 1, 1], [], []>} : vector<2x30xf32>, vector<30x30xf32>, vector<2x30xf32> -> vector<2x30xf32>
    %cst_179 = arith.constant dense<0.000000e+00> : vector<2x30xf32>
    %482 = tpu.matmul %428, %4, %cst_179 {dimension_numbers = #tpu.dot_dimension_numbers<[1], [0], [0], [1], [0, 0, 1, 1], [], []>} : vector<2x30xf32>, vector<30x30xf32>, vector<2x30xf32> -> vector<2x30xf32>
    %483 = arith.addf %481, %482 : vector<2x30xf32>
    %484 = arith.addf %483, %13 : vector<2x30xf32>
    %485 = arith.negf %484 : vector<2x30xf32>
    %486 = math.exp %485 : vector<2x30xf32>
    %cst_180 = arith.constant 1.000000e+00 : f32
    %487 = vector.broadcast %cst_180 : f32 to vector<2x30xf32>
    %488 = arith.addf %487, %486 : vector<2x30xf32>
    %489 = arith.divf %487, %488 : vector<2x30xf32>
    %cst_181 = arith.constant 1.000000e+00 : f32
    %490 = vector.broadcast %cst_181 : f32 to vector<2x30xf32>
    %491 = arith.addf %490, %489 : vector<2x30xf32>
    %cst_182 = arith.constant 1.000000e+00 : f32
    %cst_183 = arith.constant 1.000000e+01 : f32
    %492 = vector.broadcast %cst_182 : f32 to vector<2x30xf32>
    %493 = arith.maximumf %492, %491 : vector<2x30xf32>
    %494 = vector.broadcast %cst_183 : f32 to vector<2x30xf32>
    %495 = arith.minimumf %494, %493 : vector<2x30xf32>
    %496 = arith.mulf %489, %484 : vector<2x30xf32>
    %497 = arith.mulf %428, %495 : vector<2x30xf32>
    %498 = arith.subf %496, %497 : vector<2x30xf32>
    %499 = arith.addf %428, %498 : vector<2x30xf32>
    %500 = arith.index_cast %c6_i32 : i32 to index
    %c0_184 = arith.constant 0 : index
    %c0_185 = arith.constant 0 : index
    %501 = vector.load %arg12[%500, %c0_184, %c0_185] : memref<8x2x30xf32, #tpu.memory_space<vmem>>, vector<1x2x30xf32>
    %502 = vector.shape_cast %501 : vector<1x2x30xf32> to vector<2x30xf32>
    %503 = vector.shape_cast %460 : vector<2x30xf32> to vector<1x2x30xf32>
    tpu.vector_store %arg12[%500, %c0_184, %c0_185], %503 {strides = array<i32>} : memref<8x2x30xf32, #tpu.memory_space<vmem>>, vector<1x2x30xf32>,
    %504 = arith.index_cast %c6_i32 : i32 to index
    %c0_186 = arith.constant 0 : index
    %c0_187 = arith.constant 0 : index
    %505 = vector.load %arg13[%504, %c0_186, %c0_187] : memref<8x2x30xf32, #tpu.memory_space<vmem>>, vector<1x2x30xf32>
    %506 = vector.shape_cast %505 : vector<1x2x30xf32> to vector<2x30xf32>
    %507 = vector.shape_cast %479 : vector<2x30xf32> to vector<1x2x30xf32>
    tpu.vector_store %arg13[%504, %c0_186, %c0_187], %507 {strides = array<i32>} : memref<8x2x30xf32, #tpu.memory_space<vmem>>, vector<1x2x30xf32>,
    %508 = arith.index_cast %c6_i32 : i32 to index
    %c0_188 = arith.constant 0 : index
    %c0_189 = arith.constant 0 : index
    %509 = vector.load %arg14[%508, %c0_188, %c0_189] : memref<8x2x30xf32, #tpu.memory_space<vmem>>, vector<1x2x30xf32>
    %510 = vector.shape_cast %509 : vector<1x2x30xf32> to vector<2x30xf32>
    %511 = vector.shape_cast %498 : vector<2x30xf32> to vector<1x2x30xf32>
    tpu.vector_store %arg14[%508, %c0_188, %c0_189], %511 {strides = array<i32>} : memref<8x2x30xf32, #tpu.memory_space<vmem>>, vector<1x2x30xf32>,
    %c7_i32 = arith.constant 7 : i32
    %512 = arith.index_cast %c7_i32 : i32 to index
    %c0_190 = arith.constant 0 : index
    %c0_191 = arith.constant 0 : index
    %513 = vector.load %arg0[%512, %c0_190, %c0_191] : memref<8x2x30xf32, #tpu.memory_space<vmem>>, vector<1x2x30xf32>
    %514 = vector.shape_cast %513 : vector<1x2x30xf32> to vector<2x30xf32>
    %cst_192 = arith.constant dense<0.000000e+00> : vector<2x30xf32>
    %515 = tpu.matmul %461, %0, %cst_192 {dimension_numbers = #tpu.dot_dimension_numbers<[1], [0], [0], [1], [0, 0, 1, 1], [], []>} : vector<2x30xf32>, vector<30x30xf32>, vector<2x30xf32> -> vector<2x30xf32>
    %516 = arith.addf %514, %515 : vector<2x30xf32>
    %517 = arith.addf %516, %7 : vector<2x30xf32>
    %518 = arith.negf %517 : vector<2x30xf32>
    %519 = math.exp %518 : vector<2x30xf32>
    %cst_193 = arith.constant 1.000000e+00 : f32
    %520 = vector.broadcast %cst_193 : f32 to vector<2x30xf32>
    %521 = arith.addf %520, %519 : vector<2x30xf32>
    %522 = arith.divf %520, %521 : vector<2x30xf32>
    %cst_194 = arith.constant 1.000000e+00 : f32
    %523 = vector.broadcast %cst_194 : f32 to vector<2x30xf32>
    %524 = arith.addf %523, %522 : vector<2x30xf32>
    %cst_195 = arith.constant 1.000000e+00 : f32
    %cst_196 = arith.constant 1.000000e+01 : f32
    %525 = vector.broadcast %cst_195 : f32 to vector<2x30xf32>
    %526 = arith.maximumf %525, %524 : vector<2x30xf32>
    %527 = vector.broadcast %cst_196 : f32 to vector<2x30xf32>
    %528 = arith.minimumf %527, %526 : vector<2x30xf32>
    %529 = arith.mulf %522, %517 : vector<2x30xf32>
    %530 = arith.mulf %461, %528 : vector<2x30xf32>
    %531 = arith.subf %529, %530 : vector<2x30xf32>
    %532 = arith.addf %461, %531 : vector<2x30xf32>
    %cst_197 = arith.constant dense<0.000000e+00> : vector<2x30xf32>
    %533 = tpu.matmul %532, %1, %cst_197 {dimension_numbers = #tpu.dot_dimension_numbers<[1], [0], [0], [1], [0, 0, 1, 1], [], []>} : vector<2x30xf32>, vector<30x30xf32>, vector<2x30xf32> -> vector<2x30xf32>
    %cst_198 = arith.constant dense<0.000000e+00> : vector<2x30xf32>
    %534 = tpu.matmul %480, %2, %cst_198 {dimension_numbers = #tpu.dot_dimension_numbers<[1], [0], [0], [1], [0, 0, 1, 1], [], []>} : vector<2x30xf32>, vector<30x30xf32>, vector<2x30xf32> -> vector<2x30xf32>
    %535 = arith.addf %533, %534 : vector<2x30xf32>
    %536 = arith.addf %535, %10 : vector<2x30xf32>
    %537 = arith.negf %536 : vector<2x30xf32>
    %538 = math.exp %537 : vector<2x30xf32>
    %cst_199 = arith.constant 1.000000e+00 : f32
    %539 = vector.broadcast %cst_199 : f32 to vector<2x30xf32>
    %540 = arith.addf %539, %538 : vector<2x30xf32>
    %541 = arith.divf %539, %540 : vector<2x30xf32>
    %cst_200 = arith.constant 1.000000e+00 : f32
    %542 = vector.broadcast %cst_200 : f32 to vector<2x30xf32>
    %543 = arith.addf %542, %541 : vector<2x30xf32>
    %cst_201 = arith.constant 1.000000e+00 : f32
    %cst_202 = arith.constant 1.000000e+01 : f32
    %544 = vector.broadcast %cst_201 : f32 to vector<2x30xf32>
    %545 = arith.maximumf %544, %543 : vector<2x30xf32>
    %546 = vector.broadcast %cst_202 : f32 to vector<2x30xf32>
    %547 = arith.minimumf %546, %545 : vector<2x30xf32>
    %548 = arith.mulf %541, %536 : vector<2x30xf32>
    %549 = arith.mulf %480, %547 : vector<2x30xf32>
    %550 = arith.subf %548, %549 : vector<2x30xf32>
    %551 = arith.addf %480, %550 : vector<2x30xf32>
    %cst_203 = arith.constant dense<0.000000e+00> : vector<2x30xf32>
    %552 = tpu.matmul %551, %3, %cst_203 {dimension_numbers = #tpu.dot_dimension_numbers<[1], [0], [0], [1], [0, 0, 1, 1], [], []>} : vector<2x30xf32>, vector<30x30xf32>, vector<2x30xf32> -> vector<2x30xf32>
    %cst_204 = arith.constant dense<0.000000e+00> : vector<2x30xf32>
    %553 = tpu.matmul %499, %4, %cst_204 {dimension_numbers = #tpu.dot_dimension_numbers<[1], [0], [0], [1], [0, 0, 1, 1], [], []>} : vector<2x30xf32>, vector<30x30xf32>, vector<2x30xf32> -> vector<2x30xf32>
    %554 = arith.addf %552, %553 : vector<2x30xf32>
    %555 = arith.addf %554, %13 : vector<2x30xf32>
    %556 = arith.negf %555 : vector<2x30xf32>
    %557 = math.exp %556 : vector<2x30xf32>
    %cst_205 = arith.constant 1.000000e+00 : f32
    %558 = vector.broadcast %cst_205 : f32 to vector<2x30xf32>
    %559 = arith.addf %558, %557 : vector<2x30xf32>
    %560 = arith.divf %558, %559 : vector<2x30xf32>
    %cst_206 = arith.constant 1.000000e+00 : f32
    %561 = vector.broadcast %cst_206 : f32 to vector<2x30xf32>
    %562 = arith.addf %561, %560 : vector<2x30xf32>
    %cst_207 = arith.constant 1.000000e+00 : f32
    %cst_208 = arith.constant 1.000000e+01 : f32
    %563 = vector.broadcast %cst_207 : f32 to vector<2x30xf32>
    %564 = arith.maximumf %563, %562 : vector<2x30xf32>
    %565 = vector.broadcast %cst_208 : f32 to vector<2x30xf32>
    %566 = arith.minimumf %565, %564 : vector<2x30xf32>
    %567 = arith.mulf %560, %555 : vector<2x30xf32>
    %568 = arith.mulf %499, %566 : vector<2x30xf32>
    %569 = arith.subf %567, %568 : vector<2x30xf32>
    %570 = arith.addf %499, %569 : vector<2x30xf32>
    %571 = arith.index_cast %c7_i32 : i32 to index
    %c0_209 = arith.constant 0 : index
    %c0_210 = arith.constant 0 : index
    %572 = vector.load %arg12[%571, %c0_209, %c0_210] : memref<8x2x30xf32, #tpu.memory_space<vmem>>, vector<1x2x30xf32>
    %573 = vector.shape_cast %572 : vector<1x2x30xf32> to vector<2x30xf32>
    %574 = vector.shape_cast %531 : vector<2x30xf32> to vector<1x2x30xf32>
    tpu.vector_store %arg12[%571, %c0_209, %c0_210], %574 {strides = array<i32>} : memref<8x2x30xf32, #tpu.memory_space<vmem>>, vector<1x2x30xf32>,
    %575 = arith.index_cast %c7_i32 : i32 to index
    %c0_211 = arith.constant 0 : index
    %c0_212 = arith.constant 0 : index
    %576 = vector.load %arg13[%575, %c0_211, %c0_212] : memref<8x2x30xf32, #tpu.memory_space<vmem>>, vector<1x2x30xf32>
    %577 = vector.shape_cast %576 : vector<1x2x30xf32> to vector<2x30xf32>
    %578 = vector.shape_cast %550 : vector<2x30xf32> to vector<1x2x30xf32>
    tpu.vector_store %arg13[%575, %c0_211, %c0_212], %578 {strides = array<i32>} : memref<8x2x30xf32, #tpu.memory_space<vmem>>, vector<1x2x30xf32>,
    %579 = arith.index_cast %c7_i32 : i32 to index
    %c0_213 = arith.constant 0 : index
    %c0_214 = arith.constant 0 : index
    %580 = vector.load %arg14[%579, %c0_213, %c0_214] : memref<8x2x30xf32, #tpu.memory_space<vmem>>, vector<1x2x30xf32>
    %581 = vector.shape_cast %580 : vector<1x2x30xf32> to vector<2x30xf32>
    %582 = vector.shape_cast %569 : vector<2x30xf32> to vector<1x2x30xf32>
    tpu.vector_store %arg14[%579, %c0_213, %c0_214], %582 {strides = array<i32>} : memref<8x2x30xf32, #tpu.memory_space<vmem>>, vector<1x2x30xf32>,
    %c8_i32 = arith.constant 8 : i32
    %c0_215 = arith.constant 0 : index
    %c0_216 = arith.constant 0 : index
    %583 = vector.load %arg9[%c0_215, %c0_216] : memref<30x2xf32, #tpu.memory_space<vmem>>, vector<30x2xf32>
    %cst_217 = arith.constant dense<0.000000e+00> : vector<2x2xf32>
    %584 = tpu.matmul %570, %583, %cst_217 {dimension_numbers = #tpu.dot_dimension_numbers<[1], [0], [0], [1], [0, 0, 1, 1], [], []>} : vector<2x30xf32>, vector<30x2xf32>, vector<2x2xf32> -> vector<2x2xf32>
    %c0_218 = arith.constant 0 : index
    %c0_219 = arith.constant 0 : index
    %585 = vector.load %arg10[%c0_218, %c0_219] : memref<1x2xf32, #tpu.memory_space<vmem>>, vector<1x2xf32>
    %586 = vector.broadcast %585 : vector<1x2xf32> to vector<2x2xf32>
    %587 = arith.addf %584, %586 : vector<2x2xf32>
    %c0_220 = arith.constant 0 : index
    %c0_221 = arith.constant 0 : index
    %588 = vector.load %arg11[%c0_220, %c0_221] : memref<2x2xf32, #tpu.memory_space<vmem>>, vector<2x2xf32>
    tpu.vector_store %arg11[%c0_220, %c0_221], %587 {strides = array<i32>} : memref<2x2xf32, #tpu.memory_space<vmem>>, vector<2x2xf32>,
    return
  }
}

</mosaic_0001>

<bundles_post_ra>
// kernel: multi_sequence_ltc.1
= control target key start
LH: loop header
LB: loop body
LE: loop exit
PB: predicated region body
PF: predicated region fallthrough
CT: control target
= control target key end

     0   :  { %20 = vsyncpa [#allocation3], 0  ;;  %s5612_s0 = inlined_call_operand.vmem [shape: f32[8,2,30], index: 0, kind: input, shape index: {}]   ;;  %s5613_s1 = inlined_call_operand.vmem [shape: f32[30,30], index: 1, kind: input, shape index: {}]   ;;  %s5614_s2 = inlined_call_operand.hbm [shape: f32[1,30], index: 2, kind: input, shape index: {}]   ;;  %s5615_s3 = inlined_call_operand.vmem [shape: f32[30,30], index: 3, kind: input, shape index: {}]   ;;  %s5616_s4 = inlined_call_operand.vmem [shape: f32[30,30], index: 4, kind: input, shape index: {}]   ;;  %s5617_s5 = inlined_call_operand.vmem [shape: f32[1,30], index: 5, kind: input, shape index: {}]   ;;  %s5618_s6 = inlined_call_operand.hbm [shape: f32[30,30], index: 6, kind: input, shape index: {}]   ;;  %s5619_s7 = inlined_call_operand.hbm [shape: f32[30,30], index: 7, kind: input, shape index: {}]   ;;  %s5620_s8 = inlined_call_operand.vmem [shape: f32[1,30], index: 8, kind: input, shape index: {}]   ;;  %s5621_s9 = inlined_call_operand.vmem [shape: f32[30,2], index: 9, kind: input, shape index: {}]   ;;  %s5622_s10 = inlined_call_operand.vmem [shape: f32[1,2], index: 10, kind: input, shape index: {}]   ;;  %s5623_s11 = inlined_call_operand.hbm [shape: f32[2,2], index: 11, kind: output, shape index: {0}]   ;;  %s5624_s12 = inlined_call_operand.hbm [shape: f32[8,2,30], index: 12, kind: output, shape index: {1}]   ;;  %s5625_s13 = inlined_call_operand.hbm [shape: f32[8,2,30], index: 13, kind: output, shape index: {2}]   ;;  %s5626_s14 = inlined_call_operand.hbm [shape: f32[8,2,30], index: 14, kind: output, shape index: {3}]  }
   0x1   :  { %21 = vsyncpa [#allocation6], 0 }
   0x2   :  { %22 = vsyncpa [#allocation4], 0 }
   0x3   :  { %23 = vsyncpa [#allocation10], 0 }
   0x4   :  { %24 = vsyncpa [#allocation13], 0  ;;  %s4623_s29 = smov [#allocation5]  }
   0x5   :  { %s50_s30 = sshll.u32 %s4623_s29, 4  ;;  %s51_s30 = int_to_ptr.vmem [resolvable:$true] %s50_s30 }
   0x6   :  { %s4481_s15 = scalar_lea.vmem %s51_s30, 512  ;;  %p4486_p1 = scmp.lt.s32.totalorder %s51_s30, %s51_s30 }
   0x7   :  { %p4482_p0 = scmp.ne.s32.totalorder %s51_s30, %s4481_s15  ;;  %p4487_p2 = scmp.lt.s32.totalorder %s4481_s15, %s4481_s15 }
   0x9   :  { %p4488_p3 = por %p4487_p2, %p4486_p1 }
   0xb   :  { %p4489_p4 = pnand %p4488_p3, %p4482_p0 }
   0xd   :  { %4492 = shalt.err (!%p4489_p4)
}
   0xe   :  { %s4624_s16 = smov 128   ;;  %s4625_s17 = smov 8  }
   0xf   :  { %56 = dma.hbm_to_vmem [thread:$0]  %s5618_s6, 512, %s51_s30, [#allocation6], %s4624_s16, %s4624_s16, %s4625_s17  }
  0x10   :  { %s4626_s20 = smov [#allocation2]   ;;  %s4627_s22 = smov [#allocation7]  }
  0x11   :  { %s35_s21 = sshll.u32 %s4626_s20, 4  ;;  %s62_s23 = sshll.u32 %s4627_s22, 4  ;;  %s36_s21 = int_to_ptr.vmem [resolvable:$true] %s35_s21  ;;  %s63_s23 = int_to_ptr.vmem [resolvable:$true] %s62_s23 }
  0x12   :  { %s4501_s24 = scalar_lea.vmem %s36_s21, 16  ;;  %s4505_s25 = scalar_lea.vmem %s36_s21, 32 }
  0x13   :  { %p4502_p5 = scmp.ne.s32.totalorder %s36_s21, %s4501_s24  ;;  %p4506_p6 = scmp.lt.s32.totalorder %s36_s21, %s36_s21 }
  0x14   :  { %p4507_p7 = scmp.lt.s32.totalorder %s4505_s25, %s4501_s24 }
  0x16   :  { %p4508_p8 = por %p4507_p7, %p4506_p6 }
  0x18   :  { %p4509_p9 = pnand %p4508_p8, %p4502_p5 }
  0x1a   :  { %4512 = shalt.err (!%p4509_p9)
}
  0x1b   :  { %38 = dma.hbm_to_vmem [thread:$0]  %s5614_s2, 16, %s36_s21, [#allocation3]  }
  0x1c   :  { %s4521_s28 = scalar_lea.vmem %s63_s23, 512  ;;  %p4526_p11 = scmp.lt.s32.totalorder %s63_s23, %s63_s23 }
  0x1d   :  { %p4522_p10 = scmp.ne.s32.totalorder %s63_s23, %s4521_s28  ;;  %p4527_p12 = scmp.lt.s32.totalorder %s4521_s28, %s4521_s28 }
  0x1f   :  { %p4528_p13 = por %p4527_p12, %p4526_p11 }
  0x21   :  { %p4529_p0 = pnand %p4528_p13, %p4522_p10 }
  0x23   :  { %4532 = shalt.err (!%p4529_p0)
}
  0x24   :  { %68 = dma.hbm_to_vmem [thread:$0]  %s5619_s7, 512, %s63_s23, [#allocation6], %s4624_s16, %s4624_s16, %s4625_s17  }
  0x25   :  { %4613 = dma.done.wait [#allocation3], 16  }
  0x26   :  { %4614 = vsyncadd [#allocation3], 4294967280 }
  0x27   :  { %4615 = dma.done.wait [#allocation6], 1024  }
  0x28   :  { %4616 = vsyncadd [#allocation6], 4294966272  ;;  %v4628_v0 = vmov 0.0   ;;  %vm4629_vm0 = vmmov 0   ;;  %vm130_vm1 = vcmask 1045504   ;;  %v4734_v2 = vld [vmem:[%s5613_s1 + $0x10] sm:$0xff] }
  0x29   :  { %3890 = vmatprep.subr.mxu0 %v4628_v0  ;;  %3898 = vmatprep.mubr.msk.f32.mxu0 %vm4629_vm0, %v4628_v0  ;;  %v4729_v1 = vld [vmem:[%s5613_s1 + $0x18] sm:$0x3f]  ;;  %v4742_v3 = vld [vmem:[%s5613_s1 + $0x8] sm:$0xff]  ;;  %v4749_v4 = vld [vmem:[%s5613_s1] sm:$0xff]  ;;  %vm545_vm2 = vcmask 238592   ;;  %vm126_vm3 = vcmask 244736  }
  0x2a   :  { %3901 = vmatprep.subr.mxu1 %v4628_v0  ;;  %3909 = vmatprep.mubr.msk.f32.mxu1 %vm4629_vm0, %v4628_v0  ;;  %v4761_v5 = vld [vmem:[%s5616_s4 + $0x18] sm:$0x3f]  ;;  %v4769_v6 = vld [vmem:[%s5616_s4 + $0x10] sm:$0xff]  ;;  %v4776_v7 = vld [vmem:[%s5616_s4 + $0x8] sm:$0xff] }
  0x2b   :  { %3891 = vmatpush3.msk.msra.mxu0 %vm130_vm1, %v4729_v1  ;;  %3902 = vmatpush3.msk.msra.mxu1 %vm130_vm1, %v4761_v5  ;;  %v4783_v8 = vld [vmem:[%s5616_s4] sm:$0xff]  ;;  %v4788_v9 = vld [vmem:[#allocation7 + $0x18] sm:$0x3f]  ;;  %v4795_v10 = vld [vmem:[#allocation7 + $0x10] sm:$0xff] }
  0x2c   :  { %3892 = vmatprep.subr.mxu0 %v4628_v0  ;;  %3903 = vmatprep.subr.mxu1 %v4628_v0  ;;  %v4799_v11 = vld [vmem:[#allocation7 + $0x8] sm:$0xff]  ;;  %v4803_v12 = vld [vmem:[#allocation7] sm:$0xff]  ;;  %v4810_v13 = vld [vmem:[%s5615_s3 + $0x18] sm:$0x3f] }
  0x2d   :  { %3893 = vmatpush3.msra.mxu0 %v4734_v2  ;;  %3904 = vmatpush3.msra.mxu1 %v4769_v6  ;;  %v4822_v14 = vld [vmem:[%s5615_s3 + $0x10] sm:$0xff]  ;;  %v4831_v15 = vld [vmem:[%s5615_s3 + $0x8] sm:$0xff]  ;;  %v4840_v16 = vld [vmem:[%s5615_s3] sm:$0xff] }
  0x2e   :  { %3894 = vmatprep.subr.mxu0 %v4628_v0  ;;  %3905 = vmatprep.subr.mxu1 %v4628_v0  ;;  %v125_v17 = vld [vmem:[%s5612_s0] sm:$0x3]  ;;  %v4877_v37 = vld [vmem:[#allocation5 + $0x18] sm:$0x3f]  ;;  %v4882_v38 = vld [vmem:[#allocation5 + $0x10] sm:$0xff] }
  0x2f   :  { %3895 = vmatpush3.msra.mxu0 %v4742_v3  ;;  %3906 = vmatpush3.msra.mxu1 %v4776_v7  ;;  %v4851_v18 = vld [vmem:[#allocation2] ss:$0 sm:$0xff]  ;;  %v4886_v39 = vld [vmem:[#allocation5 + $0x8] sm:$0xff]  ;;  %v4890_v40 = vld [vmem:[#allocation5] sm:$0xff] }
  0x30   :  { %3896 = vmatprep.subr.mxu0 %v4628_v0  ;;  %3907 = vmatprep.subr.mxu1 %v4628_v0  ;;  %v3584_v41 = vld [vmem:[%s5612_s0 + $0x2] sm:$0x3]  ;;  %v4900_v42 = vld [vmem:[%s5617_s5] ss:$0 sm:$0xff] }
  0x31   :  { %3897 = vmatpush3.msra.mxu0 %v4749_v4  ;;  %3908 = vmatpush3.msra.mxu1 %v4783_v8 }
  0x32   :  { %3899 = vmatmul.mubr.f32.vlgmr.msra.gmra.mxu0 %v4628_v0  ;;  %3912 = vmatprep.subr.mxu0 %v4628_v0 }
  0x33   :  { %3920 = vmatprep.mubr.msk.f32.mxu0 %vm4629_vm0, %v4628_v0  ;;  %3923 = vmatprep.subr.mxu1 %v4628_v0 }
  0x34   :  { %3910 = vmatmul.mubr.f32.vlgmr.msra.gmra.mxu1 %v4628_v0  ;;  %3913 = vmatpush3.msk.msra.mxu0 %vm130_vm1, %v4810_v13 }
  0x35   :  { %3924 = vmatpush3.msk.msra.mxu1 %vm130_vm1, %v4788_v9  ;;  %3931 = vmatprep.mubr.msk.f32.mxu1 %vm4629_vm0, %v4628_v0 }
  0x36   :  { %3925 = vmatprep.subr.mxu1 %v4628_v0  ;;  %3914 = vmatprep.subr.mxu0 %v4628_v0 }
  0x37   :  { %3926 = vmatpush3.msra.mxu1 %v4795_v10  ;;  %3915 = vmatpush3.msra.mxu0 %v4822_v14 }
  0x38   :  { %3927 = vmatprep.subr.mxu1 %v4628_v0  ;;  %3916 = vmatprep.subr.mxu0 %v4628_v0 }
  0x39   :  { %3928 = vmatpush3.msra.mxu1 %v4799_v11  ;;  %3917 = vmatpush3.msra.mxu0 %v4831_v15 }
  0x3a   :  { %3929 = vmatprep.subr.mxu1 %v4628_v0  ;;  %3918 = vmatprep.subr.mxu0 %v4628_v0 }
  0x3b   :  { %3930 = vmatpush3.msra.mxu1 %v4803_v12  ;;  %3919 = vmatpush3.msra.mxu0 %v4840_v16 }
  0x3c   :  { %3945 = vmatprep.subr.mxu1 %v4628_v0  ;;  %3932 = vmatmul.mubr.f32.vlgmr.msra.gmra.mxu1 %v4628_v0 }
  0x3d   :  { %3946 = vmatpush3.msk.msra.mxu1 %vm130_vm1, %v4729_v1  ;;  %3953 = vmatprep.mubr.msk.f32.mxu1 %vm4629_vm0, %v4628_v0 }
  0x3e   :  { %3947 = vmatprep.subr.mxu1 %v4628_v0  ;;  %3934 = vmatprep.subr.mxu0 %v4628_v0 }
  0x3f   :  { %3948 = vmatpush3.msra.mxu1 %v4734_v2 }
  0x40   :  { %3949 = vmatprep.subr.mxu1 %v4628_v0 }
  0x41   :  { %3950 = vmatpush3.msra.mxu1 %v4742_v3 }
  0x42   :  { %3951 = vmatprep.subr.mxu1 %v4628_v0 }
  0x43   :  { %3952 = vmatpush3.msra.mxu1 %v4749_v4 }
  0x44   :  { %3967 = vmatprep.subr.mxu1 %v4628_v0 }
  0xf2   :  { %v200_v19 = vpop.f32.mrf.mxu0 }
  0xf3   :  { %v204_v20 = vadd.f32 %v200_v19, %v125_v17 }
  0xf4   :  { %v3900_v21 = vpop.f32.mrf.mxu0  ;;  %v288_v33 = vpop.f32.mrf.mxu1 }
  0xf5   :  { %v205_v22 = vadd.f32 %v4851_v18, %v204_v20 }
  0xf6   :  { %v3911_v34 = vpop.f32.mrf.mxu1 }
  0xf7   :  { %v3575_v23 = vmul.f32 -1.442695, %v205_v22 }
  0xf9   :  { %4354 = vpow2.f32 %v3575_v23 }
  0xfc   :  { %v4875_v35 = vpop.f32.mrf.mxu1 }
  0xfe   :  { %v3933_v36 = vpop.f32.mrf.mxu1 }
 0x106   :  { %v4355_v24 = vpop.eup %4354 }
 0x107   :  { %v209_v25 = vadd.f32 1.0, %v4355_v24 }
 0x109   :  { %4356 = vrcp.f32 %v209_v25 }
 0x116   :  { %v4357_v26 = vpop.eup %4356 }
 0x117   :  { %v212_v27 = vadd.f32 1.0, %v4357_v26  ;;  %v215_v30 = vmul.f32 %v4357_v26, %v205_v22  ;;  %v4955_v26 = vld [vmem:[%s5620_s8] ss:$0 sm:$0xff] }
 0x119   :  { %v213_v28 = vmax.f32 %v212_v27, 1.0 }
 0x11b   :  { %v214_v29 = vmin.f32 %v213_v28, 10.0 }
 0x11d   :  { %v216_v31 = vmul.f32 0.0, %v214_v29 }
 0x11f   :  { %v4854_v32 = vsub.f32 %v215_v30, %v216_v31 }
 0x121   :  { %546 = vst.msk [vmem:[#allocation9] sm:$0x3] %vm545_vm2, %v4854_v32  ;;  %3921 = vmatmul.mubr.msk.f32.vlgmr.msra.gmra.mxu0 %vm126_vm3, %v4854_v32  ;;  %3954 = vmatmul.mubr.msk.f32.vlgmr.msra.gmra.mxu1 %vm126_vm3, %v4854_v32 }
 0x122   :  { %3968 = vmatpush3.msk.msra.mxu1 %vm130_vm1, %v4810_v13  ;;  %3942 = vmatprep.mubr.msk.f32.mxu0 %vm4629_vm0, %v4628_v0 }
 0x123   :  { %3969 = vmatprep.subr.mxu1 %v4628_v0  ;;  %3975 = vmatprep.mubr.msk.f32.mxu1 %vm4629_vm0, %v4628_v0 }
 0x124   :  { %3970 = vmatpush3.msra.mxu1 %v4822_v14  ;;  %3935 = vmatpush3.msk.msra.mxu0 %vm130_vm1, %v4877_v37 }
 0x125   :  { %3971 = vmatprep.subr.mxu1 %v4628_v0  ;;  %3936 = vmatprep.subr.mxu0 %v4628_v0 }
 0x126   :  { %3972 = vmatpush3.msra.mxu1 %v4831_v15  ;;  %3937 = vmatpush3.msra.mxu0 %v4882_v38 }
 0x127   :  { %3973 = vmatprep.subr.mxu1 %v4628_v0  ;;  %3938 = vmatprep.subr.mxu0 %v4628_v0 }
 0x128   :  { %3974 = vmatpush3.msra.mxu1 %v4840_v16  ;;  %3939 = vmatpush3.msra.mxu0 %v4886_v39 }
 0x129   :  { %3989 = vmatprep.subr.mxu1 %v4628_v0  ;;  %3940 = vmatprep.subr.mxu0 %v4628_v0 }
 0x12a   :  { %3941 = vmatpush3.msra.mxu0 %v4890_v40 }
 0x12b   :  { %3956 = vmatprep.subr.mxu0 %v4628_v0 }
 0x1e1   :  { %v364_v43 = vpop.f32.mrf.mxu0  ;;  %v617_v44 = vpop.f32.mrf.mxu1 }
 0x1e2   :  { %v365_v45 = vadd.f32 %v364_v43, %v288_v33  ;;  %v621_v46 = vadd.f32 %v3584_v41, %v617_v44 }
 0x1e3   :  { %v3922_v47 = vpop.f32.mrf.mxu0  ;;  %v3955_v48 = vpop.f32.mrf.mxu1 }
 0x1e4   :  { %v368_v49 = vadd.f32 %v4900_v42, %v365_v45  ;;  %v622_v50 = vadd.f32 %v4851_v18, %v621_v46 }
 0x1e6   :  { %v3579_v51 = vmul.f32 -1.442695, %v368_v49  ;;  %v3587_v52 = vmul.f32 -1.442695, %v622_v50 }
 0x1e8   :  { %4358 = vpow2.f32 %v3579_v51 }
 0x1e9   :  { %4360 = vpow2.f32 %v3587_v52 }
 0x1f5   :  { %v4359_v53 = vpop.eup %4358 }
 0x1f6   :  { %v4361_v54 = vpop.eup %4360  ;;  %v372_v55 = vadd.f32 1.0, %v4359_v53 }
 0x1f7   :  { %v626_v56 = vadd.f32 1.0, %v4361_v54 }
 0x1f8   :  { %4362 = vrcp.f32 %v372_v55 }
 0x1f9   :  { %4364 = vrcp.f32 %v626_v56 }
 0x205   :  { %v4363_v57 = vpop.eup %4362 }
 0x206   :  { %v4365_v58 = vpop.eup %4364  ;;  %v375_v59 = vadd.f32 1.0, %v4363_v57  ;;  %v378_v19 = vmul.f32 %v4363_v57, %v368_v49 }
 0x207   :  { %v629_v60 = vadd.f32 1.0, %v4365_v58  ;;  %v632_v21 = vmul.f32 %v4365_v58, %v622_v50 }
 0x208   :  { %v376_v61 = vmax.f32 %v375_v59, 1.0 }
 0x209   :  { %v630_v62 = vmax.f32 %v629_v60, 1.0 }
 0x20a   :  { %v377_v63 = vmin.f32 %v376_v61, 10.0 }
 0x20b   :  { %v631_v17 = vmin.f32 %v630_v62, 10.0 }
 0x20c   :  { %v379_v20 = vmul.f32 0.0, %v377_v63 }
 0x20d   :  { %v633_v22 = vmul.f32 %v631_v17, %v4854_v32 }
 0x20e   :  { %v4905_v23 = vsub.f32 %v378_v19, %v379_v20  ;;  %v3598_v19 = vld [vmem:[%s5612_s0 + $0x4] sm:$0x3] }
 0x20f   :  { %v634_v24 = vsub.f32 %v632_v21, %v633_v22 }
 0x210   :  { %547 = vst.msk [vmem:[#allocation11] sm:$0x3] %vm545_vm2, %v4905_v23  ;;  %3943 = vmatmul.mubr.msk.f32.vlgmr.msra.gmra.mxu0 %vm126_vm3, %v4905_v23 }
 0x211   :  { %v4912_v25 = vadd.f32 %v634_v24, %v4854_v32  ;;  %954 = vst.msk [vmem:[#allocation9 + $0x2] sm:$0x3] %vm545_vm2, %v634_v24  ;;  %3957 = vmatpush3.msk.msra.mxu0 %vm130_vm1, %v4761_v5  ;;  %3964 = vmatprep.mubr.msk.f32.mxu0 %vm4629_vm0, %v4628_v0 }
 0x212   :  { %3958 = vmatprep.subr.mxu0 %v4628_v0 }
 0x213   :  { %3959 = vmatpush3.msra.mxu0 %v4769_v6  ;;  %3976 = vmatmul.mubr.msk.f32.vlgmr.msra.gmra.mxu1 %vm126_vm3, %v4912_v25 }
 0x214   :  { %3960 = vmatprep.subr.mxu0 %v4628_v0  ;;  %3990 = vmatpush3.msk.msra.mxu1 %vm130_vm1, %v4877_v37 }
 0x215   :  { %3961 = vmatpush3.msra.mxu0 %v4776_v7  ;;  %3991 = vmatprep.subr.mxu1 %v4628_v0 }
 0x216   :  { %3962 = vmatprep.subr.mxu0 %v4628_v0  ;;  %3992 = vmatpush3.msra.mxu1 %v4882_v38 }
 0x217   :  { %3963 = vmatpush3.msra.mxu0 %v4783_v8  ;;  %3993 = vmatprep.subr.mxu1 %v4628_v0 }
 0x218   :  { %3965 = vmatmul.mubr.msk.f32.vlgmr.msra.gmra.mxu0 %vm126_vm3, %v4905_v23  ;;  %3978 = vmatprep.subr.mxu0 %v4628_v0 }
 0x219   :  { %3979 = vmatpush3.msk.msra.mxu0 %vm130_vm1, %v4788_v9  ;;  %3986 = vmatprep.mubr.msk.f32.mxu0 %vm4629_vm0, %v4628_v0 }
 0x21a   :  { %3980 = vmatprep.subr.mxu0 %v4628_v0  ;;  %3994 = vmatpush3.msra.mxu1 %v4886_v39 }
 0x21b   :  { %3981 = vmatpush3.msra.mxu0 %v4795_v10  ;;  %3995 = vmatprep.subr.mxu1 %v4628_v0 }
 0x21c   :  { %3982 = vmatprep.subr.mxu0 %v4628_v0  ;;  %3996 = vmatpush3.msra.mxu1 %v4890_v40 }
 0x21d   :  { %3983 = vmatpush3.msra.mxu0 %v4799_v11  ;;  %3997 = vmatprep.mubr.msk.f32.mxu1 %vm4629_vm0, %v4628_v0 }
 0x21e   :  { %3984 = vmatprep.subr.mxu0 %v4628_v0  ;;  %4011 = vmatprep.subr.mxu1 %v4628_v0 }
 0x21f   :  { %3985 = vmatpush3.msra.mxu0 %v4803_v12 }
 0x220   :  { %4000 = vmatprep.subr.mxu0 %v4628_v0 }
 0x2d0   :  { %v527_v27 = vpop.f32.mrf.mxu0 }
 0x2d1   :  { %v528_v28 = vadd.f32 %v527_v27, %v4875_v35 }
 0x2d2   :  { %v3944_v29 = vpop.f32.mrf.mxu0 }
 0x2d3   :  { %v531_v30 = vadd.f32 %v4955_v26, %v528_v28  ;;  %v775_v31 = vpop.f32.mrf.mxu1 }
 0x2d5   :  { %v3583_v32 = vmul.f32 -1.442695, %v531_v30  ;;  %v3977_v33 = vpop.f32.mrf.mxu1 }
 0x2d7   :  { %4366 = vpow2.f32 %v3583_v32 }
 0x2d8   :  { %v702_v34 = vpop.f32.mrf.mxu0 }
 0x2d9   :  { %v776_v36 = vadd.f32 %v775_v31, %v702_v34 }
 0x2da   :  { %v3966_v41 = vpop.f32.mrf.mxu0 }
 0x2db   :  { %v779_v43 = vadd.f32 %v4900_v42, %v776_v36 }
 0x2dd   :  { %v3592_v44 = vmul.f32 -1.442695, %v779_v43 }
 0x2df   :  { %4368 = vpow2.f32 %v3592_v44 }
 0x2e4   :  { %v4367_v45 = vpop.eup %4366 }
 0x2e5   :  { %v535_v46 = vadd.f32 1.0, %v4367_v45 }
 0x2e7   :  { %4370 = vrcp.f32 %v535_v46 }
 0x2ec   :  { %v4369_v47 = vpop.eup %4368 }
 0x2ed   :  { %v783_v48 = vadd.f32 1.0, %v4369_v47 }
 0x2ef   :  { %4372 = vrcp.f32 %v783_v48 }
 0x2f4   :  { %v4371_v35 = vpop.eup %4370 }
 0x2f5   :  { %v538_v49 = vadd.f32 1.0, %v4371_v35  ;;  %v541_v52 = vmul.f32 %v4371_v35, %v531_v30 }
 0x2f7   :  { %v539_v50 = vmax.f32 %v538_v49, 1.0 }
 0x2f9   :  { %v540_v51 = vmin.f32 %v539_v50, 10.0 }
 0x2fb   :  { %v542_v53 = vmul.f32 0.0, %v540_v51 }
 0x2fc   :  { %v4373_v54 = vpop.eup %4372 }
 0x2fd   :  { %v4960_v55 = vsub.f32 %v541_v52, %v542_v53  ;;  %v786_v56 = vadd.f32 1.0, %v4373_v54  ;;  %v789_v59 = vmul.f32 %v4373_v54, %v779_v43 }
 0x2ff   :  { %548 = vst.msk [vmem:[#allocation12] sm:$0x3] %vm545_vm2, %v4960_v55  ;;  %v787_v57 = vmax.f32 %v786_v56, 1.0  ;;  %3987 = vmatmul.mubr.msk.f32.vlgmr.msra.gmra.mxu0 %vm126_vm3, %v4960_v55 }
 0x300   :  { %4001 = vmatpush3.msk.msra.mxu0 %vm130_vm1, %v4729_v1  ;;  %4008 = vmatprep.mubr.msk.f32.mxu0 %vm4629_vm0, %v4628_v0 }
 0x301   :  { %v788_v58 = vmin.f32 %v787_v57, 10.0  ;;  %4002 = vmatprep.subr.mxu0 %v4628_v0 }
 0x302   :  { %4003 = vmatpush3.msra.mxu0 %v4734_v2 }
 0x303   :  { %v790_v60 = vmul.f32 %v788_v58, %v4905_v23  ;;  %4004 = vmatprep.subr.mxu0 %v4628_v0 }
 0x304   :  { %4005 = vmatpush3.msra.mxu0 %v4742_v3 }
 0x305   :  { %v791_v61 = vsub.f32 %v789_v59, %v790_v60  ;;  %4006 = vmatprep.subr.mxu0 %v4628_v0 }
 0x306   :  { %4007 = vmatpush3.msra.mxu0 %v4749_v4 }
 0x307   :  { %v4978_v62 = vadd.f32 %v791_v61, %v4905_v23  ;;  %956 = vst.msk [vmem:[#allocation11 + $0x2] sm:$0x3] %vm545_vm2, %v791_v61  ;;  %4009 = vmatmul.mubr.msk.f32.vlgmr.msra.gmra.mxu0 %vm126_vm3, %v4912_v25  ;;  %4022 = vmatprep.subr.mxu0 %v4628_v0 }
 0x308   :  { %4023 = vmatpush3.msk.msra.mxu0 %vm130_vm1, %v4810_v13  ;;  %4030 = vmatprep.mubr.msk.f32.mxu0 %vm4629_vm0, %v4628_v0 }
 0x309   :  { %3998 = vmatmul.mubr.msk.f32.vlgmr.msra.gmra.mxu1 %vm126_vm3, %v4978_v62  ;;  %4024 = vmatprep.subr.mxu0 %v4628_v0 }
 0x30a   :  { %4012 = vmatpush3.msk.msra.mxu1 %vm130_vm1, %v4761_v5  ;;  %4019 = vmatprep.mubr.msk.f32.mxu1 %vm4629_vm0, %v4628_v0 }
 0x30b   :  { %4013 = vmatprep.subr.mxu1 %v4628_v0  ;;  %4025 = vmatpush3.msra.mxu0 %v4822_v14 }
 0x30c   :  { %4014 = vmatpush3.msra.mxu1 %v4769_v6  ;;  %4026 = vmatprep.subr.mxu0 %v4628_v0 }
 0x30d   :  { %4015 = vmatprep.subr.mxu1 %v4628_v0  ;;  %4027 = vmatpush3.msra.mxu0 %v4831_v15 }
 0x30e   :  { %4016 = vmatpush3.msra.mxu1 %v4776_v7  ;;  %4028 = vmatprep.subr.mxu0 %v4628_v0 }
 0x30f   :  { %4017 = vmatprep.subr.mxu1 %v4628_v0  ;;  %4029 = vmatpush3.msra.mxu0 %v4840_v16 }
 0x310   :  { %4018 = vmatpush3.msra.mxu1 %v4783_v8  ;;  %4044 = vmatprep.subr.mxu0 %v4628_v0 }
 0x311   :  { %4020 = vmatmul.mubr.msk.f32.vlgmr.msra.gmra.mxu1 %vm126_vm3, %v4978_v62  ;;  %4033 = vmatprep.subr.mxu1 %v4628_v0 }
 0x312   :  { %4034 = vmatpush3.msk.msra.mxu1 %vm130_vm1, %v4788_v9  ;;  %4041 = vmatprep.mubr.msk.f32.mxu1 %vm4629_vm0, %v4628_v0 }
 0x313   :  { %4035 = vmatprep.subr.mxu1 %v4628_v0 }
 0x314   :  { %4036 = vmatpush3.msra.mxu1 %v4795_v10 }
 0x315   :  { %4037 = vmatprep.subr.mxu1 %v4628_v0 }
 0x316   :  { %4038 = vmatpush3.msra.mxu1 %v4799_v11 }
 0x317   :  { %4039 = vmatprep.subr.mxu1 %v4628_v0 }
 0x318   :  { %4040 = vmatpush3.msra.mxu1 %v4803_v12 }
 0x319   :  { %4055 = vmatprep.subr.mxu1 %v4628_v0 }
 0x3bf   :  { %v862_v63 = vpop.f32.mrf.mxu0 }
 0x3c1   :  { %v3988_v17 = vpop.f32.mrf.mxu0 }
 0x3c7   :  { %v1027_v20 = vpop.f32.mrf.mxu0 }
 0x3c8   :  { %v1031_v21 = vadd.f32 %v3598_v19, %v1027_v20  ;;  %v3612_v20 = vld [vmem:[%s5612_s0 + $0x6] sm:$0x3] }
 0x3c9   :  { %v935_v22 = vpop.f32.mrf.mxu1  ;;  %v4010_v23 = vpop.f32.mrf.mxu0 }
 0x3ca   :  { %v1032_v24 = vadd.f32 %v4851_v18, %v1031_v21  ;;  %v936_v27 = vadd.f32 %v935_v22, %v862_v63 }
 0x3cb   :  { %v3999_v28 = vpop.f32.mrf.mxu1 }
 0x3cc   :  { %v3601_v29 = vmul.f32 -1.442695, %v1032_v24  ;;  %v939_v30 = vadd.f32 %v4955_v26, %v936_v27 }
 0x3ce   :  { %4374 = vpow2.f32 %v3601_v29  ;;  %v3597_v31 = vmul.f32 -1.442695, %v939_v30 }
 0x3d0   :  { %4376 = vpow2.f32 %v3597_v31 }
 0x3d1   :  { %v1112_v32 = vpop.f32.mrf.mxu1 }
 0x3d3   :  { %v4021_v33 = vpop.f32.mrf.mxu1 }
 0x3db   :  { %v4375_v34 = vpop.eup %4374 }
 0x3dc   :  { %v1036_v36 = vadd.f32 1.0, %v4375_v34 }
 0x3dd   :  { %v4377_v41 = vpop.eup %4376 }
 0x3de   :  { %4378 = vrcp.f32 %v1036_v36  ;;  %v943_v43 = vadd.f32 1.0, %v4377_v41 }
 0x3e0   :  { %4380 = vrcp.f32 %v943_v43 }
 0x3eb   :  { %v4379_v44 = vpop.eup %4378 }
 0x3ec   :  { %v1039_v45 = vadd.f32 1.0, %v4379_v44  ;;  %v1042_v50 = vmul.f32 %v4379_v44, %v1032_v24 }
 0x3ed   :  { %v4381_v46 = vpop.eup %4380 }
 0x3ee   :  { %v1040_v47 = vmax.f32 %v1039_v45, 1.0  ;;  %v946_v48 = vadd.f32 1.0, %v4381_v46  ;;  %v949_v54 = vmul.f32 %v4381_v46, %v939_v30 }
 0x3f0   :  { %v1041_v35 = vmin.f32 %v1040_v47, 10.0  ;;  %v947_v49 = vmax.f32 %v946_v48, 1.0 }
 0x3f2   :  { %v1043_v51 = vmul.f32 %v1041_v35, %v4912_v25  ;;  %v948_v52 = vmin.f32 %v947_v49, 10.0 }
 0x3f4   :  { %v1044_v53 = vsub.f32 %v1042_v50, %v1043_v51  ;;  %v950_v56 = vmul.f32 %v948_v52, %v4960_v55 }
 0x3f6   :  { %v5029_v57 = vadd.f32 %v1044_v53, %v4912_v25  ;;  %1364 = vst.msk [vmem:[#allocation9 + $0x4] sm:$0x3] %vm545_vm2, %v1044_v53  ;;  %v951_v58 = vsub.f32 %v949_v54, %v950_v56 }
 0x3f8   :  { %v5033_v59 = vadd.f32 %v951_v58, %v4960_v55  ;;  %958 = vst.msk [vmem:[#allocation12 + $0x2] sm:$0x3] %vm545_vm2, %v951_v58  ;;  %4031 = vmatmul.mubr.msk.f32.vlgmr.msra.gmra.mxu0 %vm126_vm3, %v5029_v57 }
 0x3f9   :  { %4045 = vmatpush3.msk.msra.mxu0 %vm130_vm1, %v4877_v37  ;;  %4052 = vmatprep.mubr.msk.f32.mxu0 %vm4629_vm0, %v4628_v0 }
 0x3fa   :  { %4042 = vmatmul.mubr.msk.f32.vlgmr.msra.gmra.mxu1 %vm126_vm3, %v5033_v59  ;;  %4046 = vmatprep.subr.mxu0 %v4628_v0 }
 0x3fb   :  { %4056 = vmatpush3.msk.msra.mxu1 %vm130_vm1, %v4729_v1  ;;  %4063 = vmatprep.mubr.msk.f32.mxu1 %vm4629_vm0, %v4628_v0 }
 0x3fc   :  { %4057 = vmatprep.subr.mxu1 %v4628_v0  ;;  %4047 = vmatpush3.msra.mxu0 %v4882_v38 }
 0x3fd   :  { %4058 = vmatpush3.msra.mxu1 %v4734_v2  ;;  %4048 = vmatprep.subr.mxu0 %v4628_v0 }
 0x3fe   :  { %4059 = vmatprep.subr.mxu1 %v4628_v0  ;;  %4049 = vmatpush3.msra.mxu0 %v4886_v39 }
 0x3ff   :  { %4060 = vmatpush3.msra.mxu1 %v4742_v3  ;;  %4050 = vmatprep.subr.mxu0 %v4628_v0 }
 0x400   :  { %4061 = vmatprep.subr.mxu1 %v4628_v0  ;;  %4051 = vmatpush3.msra.mxu0 %v4890_v40 }
 0x401   :  { %4062 = vmatpush3.msra.mxu1 %v4749_v4  ;;  %4066 = vmatprep.subr.mxu0 %v4628_v0 }
 0x402   :  { %4064 = vmatmul.mubr.msk.f32.vlgmr.msra.gmra.mxu1 %vm126_vm3, %v5029_v57  ;;  %4077 = vmatprep.subr.mxu1 %v4628_v0 }
 0x403   :  { %4078 = vmatpush3.msk.msra.mxu1 %vm130_vm1, %v4810_v13  ;;  %4085 = vmatprep.mubr.msk.f32.mxu1 %vm4629_vm0, %v4628_v0 }
 0x404   :  { %4079 = vmatprep.subr.mxu1 %v4628_v0 }
 0x405   :  { %4080 = vmatpush3.msra.mxu1 %v4822_v14 }
 0x406   :  { %4081 = vmatprep.subr.mxu1 %v4628_v0 }
 0x407   :  { %4082 = vmatpush3.msra.mxu1 %v4831_v15 }
 0x408   :  { %4083 = vmatprep.subr.mxu1 %v4628_v0 }
 0x409   :  { %4084 = vmatpush3.msra.mxu1 %v4840_v16 }
 0x40a   :  { %4099 = vmatprep.subr.mxu1 %v4628_v0 }
 0x4b8   :  { %v1185_v25 = vpop.f32.mrf.mxu0 }
 0x4b9   :  { %v1186_v55 = vadd.f32 %v1185_v25, %v1112_v32 }
 0x4ba   :  { %v4032_v60 = vpop.f32.mrf.mxu0  ;;  %v5075_v61 = vpop.f32.mrf.mxu1 }
 0x4bb   :  { %v1189_v63 = vadd.f32 %v4900_v42, %v1186_v55 }
 0x4bc   :  { %v4043_v17 = vpop.f32.mrf.mxu1 }
 0x4bd   :  { %v3606_v19 = vmul.f32 -1.442695, %v1189_v63 }
 0x4bf   :  { %4382 = vpow2.f32 %v3606_v19 }
 0x4c2   :  { %v1437_v21 = vpop.f32.mrf.mxu1 }
 0x4c3   :  { %v1441_v22 = vadd.f32 %v3612_v20, %v1437_v21 }
 0x4c4   :  { %v4065_v23 = vpop.f32.mrf.mxu1 }
 0x4c5   :  { %v1442_v24 = vadd.f32 %v4851_v18, %v1441_v22 }
 0x4c7   :  { %v3615_v27 = vmul.f32 -1.442695, %v1442_v24 }
 0x4c9   :  { %4384 = vpow2.f32 %v3615_v27 }
 0x4cc   :  { %v4383_v28 = vpop.eup %4382 }
 0x4cd   :  { %v1193_v29 = vadd.f32 1.0, %v4383_v28 }
 0x4cf   :  { %4386 = vrcp.f32 %v1193_v29 }
 0x4d6   :  { %v4385_v30 = vpop.eup %4384 }
 0x4d7   :  { %v1446_v31 = vadd.f32 1.0, %v4385_v30 }
 0x4d9   :  { %4388 = vrcp.f32 %v1446_v31 }
 0x4dc   :  { %v4387_v32 = vpop.eup %4386 }
 0x4dd   :  { %v1196_v33 = vadd.f32 1.0, %v4387_v32  ;;  %v1199_v41 = vmul.f32 %v4387_v32, %v1189_v63 }
 0x4df   :  { %v1197_v34 = vmax.f32 %v1196_v33, 1.0 }
 0x4e1   :  { %v1198_v36 = vmin.f32 %v1197_v34, 10.0 }
 0x4e3   :  { %v1200_v43 = vmul.f32 %v1198_v36, %v4978_v62 }
 0x4e5   :  { %v1201_v44 = vsub.f32 %v1199_v41, %v1200_v43 }
 0x4e6   :  { %v4389_v45 = vpop.eup %4388 }
 0x4e7   :  { %v5084_v46 = vadd.f32 %v1201_v44, %v4978_v62  ;;  %1366 = vst.msk [vmem:[#allocation11 + $0x4] sm:$0x3] %vm545_vm2, %v1201_v44  ;;  %v1449_v47 = vadd.f32 1.0, %v4389_v45  ;;  %v1452_v62 = vmul.f32 %v4389_v45, %v1442_v24 }
 0x4e9   :  { %v1450_v48 = vmax.f32 %v1449_v47, 1.0  ;;  %4053 = vmatmul.mubr.msk.f32.vlgmr.msra.gmra.mxu0 %vm126_vm3, %v5084_v46 }
 0x4ea   :  { %4067 = vmatpush3.msk.msra.mxu0 %vm130_vm1, %v4761_v5  ;;  %4074 = vmatprep.mubr.msk.f32.mxu0 %vm4629_vm0, %v4628_v0 }
 0x4eb   :  { %v1451_v35 = vmin.f32 %v1450_v48, 10.0  ;;  %4068 = vmatprep.subr.mxu0 %v4628_v0 }
 0x4ec   :  { %4069 = vmatpush3.msra.mxu0 %v4769_v6 }
 0x4ed   :  { %v1453_v49 = vmul.f32 %v1451_v35, %v5029_v57  ;;  %4070 = vmatprep.subr.mxu0 %v4628_v0 }
 0x4ee   :  { %4071 = vmatpush3.msra.mxu0 %v4776_v7 }
 0x4ef   :  { %v1454_v50 = vsub.f32 %v1452_v62, %v1453_v49  ;;  %4072 = vmatprep.subr.mxu0 %v4628_v0 }
 0x4f0   :  { %4073 = vmatpush3.msra.mxu0 %v4783_v8 }
 0x4f1   :  { %v5101_v51 = vadd.f32 %v1454_v50, %v5029_v57  ;;  %1774 = vst.msk [vmem:[#allocation9 + $0x6] sm:$0x3] %vm545_vm2, %v1454_v50  ;;  %4075 = vmatmul.mubr.msk.f32.vlgmr.msra.gmra.mxu0 %vm126_vm3, %v5084_v46  ;;  %4088 = vmatprep.subr.mxu0 %v4628_v0 }
 0x4f2   :  { %4089 = vmatpush3.msk.msra.mxu0 %vm130_vm1, %v4788_v9  ;;  %4096 = vmatprep.mubr.msk.f32.mxu0 %vm4629_vm0, %v4628_v0 }
 0x4f3   :  { %4086 = vmatmul.mubr.msk.f32.vlgmr.msra.gmra.mxu1 %vm126_vm3, %v5101_v51  ;;  %4090 = vmatprep.subr.mxu0 %v4628_v0 }
 0x4f4   :  { %4091 = vmatpush3.msra.mxu0 %v4795_v10  ;;  %4100 = vmatpush3.msk.msra.mxu1 %vm130_vm1, %v4877_v37 }
 0x4f5   :  { %4092 = vmatprep.subr.mxu0 %v4628_v0  ;;  %4101 = vmatprep.subr.mxu1 %v4628_v0 }
 0x4f6   :  { %4093 = vmatpush3.msra.mxu0 %v4799_v11  ;;  %4102 = vmatpush3.msra.mxu1 %v4882_v38 }
 0x4f7   :  { %4094 = vmatprep.subr.mxu0 %v4628_v0  ;;  %4103 = vmatprep.subr.mxu1 %v4628_v0 }
 0x4f8   :  { %4095 = vmatpush3.msra.mxu0 %v4803_v12  ;;  %4104 = vmatpush3.msra.mxu1 %v4886_v39 }
 0x4f9   :  { %4110 = vmatprep.subr.mxu0 %v4628_v0  ;;  %4105 = vmatprep.subr.mxu1 %v4628_v0 }
 0x4fa   :  { %4106 = vmatpush3.msra.mxu1 %v4890_v40  ;;  %4107 = vmatprep.mubr.msk.f32.mxu1 %vm4629_vm0, %v4628_v0 }
 0x4fb   :  { %4121 = vmatprep.subr.mxu1 %v4628_v0 }
 0x5a9   :  { %v1345_v52 = vpop.f32.mrf.mxu0 }
 0x5aa   :  { %v1346_v53 = vadd.f32 %v1345_v52, %v5075_v61 }
 0x5ab   :  { %v4054_v54 = vpop.f32.mrf.mxu0 }
 0x5ac   :  { %v1349_v56 = vadd.f32 %v4955_v26, %v1346_v53 }
 0x5ae   :  { %v3611_v57 = vmul.f32 -1.442695, %v1349_v56 }
 0x5b0   :  { %4390 = vpow2.f32 %v3611_v57 }
 0x5b1   :  { %v1522_v58 = vpop.f32.mrf.mxu0 }
 0x5b3   :  { %v4076_v25 = vpop.f32.mrf.mxu0  ;;  %v1595_v55 = vpop.f32.mrf.mxu1 }
 0x5b4   :  { %v1596_v60 = vadd.f32 %v1595_v55, %v1522_v58 }
 0x5b5   :  { %v4087_v63 = vpop.f32.mrf.mxu1 }
 0x5b6   :  { %v1599_v17 = vadd.f32 %v4900_v42, %v1596_v60 }
 0x5b8   :  { %v3620_v19 = vmul.f32 -1.442695, %v1599_v17 }
 0x5ba   :  { %4392 = vpow2.f32 %v3620_v19 }
 0x5bd   :  { %v4391_v20 = vpop.eup %4390 }
 0x5be   :  { %v1353_v21 = vadd.f32 1.0, %v4391_v20 }
 0x5c0   :  { %4394 = vrcp.f32 %v1353_v21 }
 0x5c7   :  { %v4393_v22 = vpop.eup %4392 }
 0x5c8   :  { %v1603_v23 = vadd.f32 1.0, %v4393_v22 }
 0x5ca   :  { %4396 = vrcp.f32 %v1603_v23 }
 0x5cd   :  { %v4395_v61 = vpop.eup %4394 }
 0x5ce   :  { %v1356_v24 = vadd.f32 1.0, %v4395_v61  ;;  %v1359_v29 = vmul.f32 %v4395_v61, %v1349_v56  ;;  %v5234_v61 = vld [vmem:[%s5613_s1 + $0x10] sm:$0xff] }
 0x5d0   :  { %v1357_v27 = vmax.f32 %v1356_v24, 1.0  ;;  %v5243_v24 = vld [vmem:[%s5613_s1 + $0x8] sm:$0xff] }
 0x5d2   :  { %v1358_v28 = vmin.f32 %v1357_v27, 10.0  ;;  %v5252_v27 = vld [vmem:[%s5613_s1] sm:$0xff] }
 0x5d4   :  { %v1360_v30 = vmul.f32 %v1358_v28, %v5033_v59 }
 0x5d6   :  { %v1361_v31 = vsub.f32 %v1359_v29, %v1360_v30 }
 0x5d7   :  { %v4397_v32 = vpop.eup %4396 }
 0x5d8   :  { %v5136_v33 = vadd.f32 %v1361_v31, %v5033_v59  ;;  %1368 = vst.msk [vmem:[#allocation12 + $0x4] sm:$0x3] %vm545_vm2, %v1361_v31  ;;  %v1606_v34 = vadd.f32 1.0, %v4397_v32  ;;  %v1609_v59 = vmul.f32 %v4397_v32, %v1599_v17 }
 0x5da   :  { %v1607_v36 = vmax.f32 %v1606_v34, 1.0  ;;  %4097 = vmatmul.mubr.msk.f32.vlgmr.msra.gmra.mxu0 %vm126_vm3, %v5136_v33 }
 0x5db   :  { %4111 = vmatpush3.msk.msra.mxu0 %vm130_vm1, %v4729_v1  ;;  %4118 = vmatprep.mubr.msk.f32.mxu0 %vm4629_vm0, %v4628_v0 }
 0x5dc   :  { %v1608_v41 = vmin.f32 %v1607_v36, 10.0  ;;  %4112 = vmatprep.subr.mxu0 %v4628_v0 }
 0x5dd   :  { %4113 = vmatpush3.msra.mxu0 %v4734_v2 }
 0x5de   :  { %v1610_v43 = vmul.f32 %v1608_v41, %v5084_v46  ;;  %4114 = vmatprep.subr.mxu0 %v4628_v0 }
 0x5df   :  { %4115 = vmatpush3.msra.mxu0 %v4742_v3 }
 0x5e0   :  { %v1611_v44 = vsub.f32 %v1609_v59, %v1610_v43  ;;  %4116 = vmatprep.subr.mxu0 %v4628_v0 }
 0x5e1   :  { %4117 = vmatpush3.msra.mxu0 %v4749_v4  ;;  %v3626_v4 = vld [vmem:[%s5612_s0 + $0x8] sm:$0x3] }
 0x5e2   :  { %v5153_v1 = vadd.f32 %v1611_v44, %v5084_v46  ;;  %1776 = vst.msk [vmem:[#allocation11 + $0x6] sm:$0x3] %vm545_vm2, %v1611_v44  ;;  %4119 = vmatmul.mubr.msk.f32.vlgmr.msra.gmra.mxu0 %vm126_vm3, %v5101_v51  ;;  %4132 = vmatprep.subr.mxu0 %v4628_v0 }
 0x5e3   :  { %4133 = vmatpush3.msk.msra.mxu0 %vm130_vm1, %v4810_v13  ;;  %4140 = vmatprep.mubr.msk.f32.mxu0 %vm4629_vm0, %v4628_v0 }
 0x5e4   :  { %4108 = vmatmul.mubr.msk.f32.vlgmr.msra.gmra.mxu1 %vm126_vm3, %v5153_v1  ;;  %4134 = vmatprep.subr.mxu0 %v4628_v0 }
 0x5e5   :  { %4122 = vmatpush3.msk.msra.mxu1 %vm130_vm1, %v4761_v5  ;;  %4129 = vmatprep.mubr.msk.f32.mxu1 %vm4629_vm0, %v4628_v0 }
 0x5e6   :  { %4123 = vmatprep.subr.mxu1 %v4628_v0  ;;  %4135 = vmatpush3.msra.mxu0 %v4822_v14 }
 0x5e7   :  { %4124 = vmatpush3.msra.mxu1 %v4769_v6  ;;  %4136 = vmatprep.subr.mxu0 %v4628_v0 }
 0x5e8   :  { %4125 = vmatprep.subr.mxu1 %v4628_v0  ;;  %4137 = vmatpush3.msra.mxu0 %v4831_v15 }
 0x5e9   :  { %4126 = vmatpush3.msra.mxu1 %v4776_v7  ;;  %4138 = vmatprep.subr.mxu0 %v4628_v0 }
 0x5ea   :  { %4127 = vmatprep.subr.mxu1 %v4628_v0  ;;  %4139 = vmatpush3.msra.mxu0 %v4840_v16 }
 0x5eb   :  { %4128 = vmatpush3.msra.mxu1 %v4783_v8  ;;  %4154 = vmatprep.subr.mxu0 %v4628_v0 }
 0x5ec   :  { %4130 = vmatmul.mubr.msk.f32.vlgmr.msra.gmra.mxu1 %vm126_vm3, %v5153_v1  ;;  %4143 = vmatprep.subr.mxu1 %v4628_v0 }
 0x5ed   :  { %4144 = vmatpush3.msk.msra.mxu1 %vm130_vm1, %v4788_v9  ;;  %4151 = vmatprep.mubr.msk.f32.mxu1 %vm4629_vm0, %v4628_v0 }
 0x5ee   :  { %4145 = vmatprep.subr.mxu1 %v4628_v0 }
 0x5ef   :  { %4146 = vmatpush3.msra.mxu1 %v4795_v10 }
 0x5f0   :  { %4147 = vmatprep.subr.mxu1 %v4628_v0 }
 0x5f1   :  { %4148 = vmatpush3.msra.mxu1 %v4799_v11 }
 0x5f2   :  { %4149 = vmatprep.subr.mxu1 %v4628_v0 }
 0x5f3   :  { %4150 = vmatpush3.msra.mxu1 %v4803_v12 }
 0x5f4   :  { %4165 = vmatprep.subr.mxu1 %v4628_v0 }
 0x69a   :  { %v1682_v2 = vpop.f32.mrf.mxu0 }
 0x69c   :  { %v4098_v3 = vpop.f32.mrf.mxu0 }
 0x6a2   :  { %v1847_v5 = vpop.f32.mrf.mxu0 }
 0x6a3   :  { %v1851_v6 = vadd.f32 %v3626_v4, %v1847_v5 }
 0x6a4   :  { %v1755_v7 = vpop.f32.mrf.mxu1  ;;  %v4120_v8 = vpop.f32.mrf.mxu0 }
 0x6a5   :  { %v1852_v9 = vadd.f32 %v4851_v18, %v1851_v6  ;;  %v1756_v10 = vadd.f32 %v1755_v7, %v1682_v2 }
 0x6a6   :  { %v4109_v11 = vpop.f32.mrf.mxu1 }
 0x6a7   :  { %v3629_v45 = vmul.f32 -1.442695, %v1852_v9  ;;  %v1759_v46 = vadd.f32 %v4955_v26, %v1756_v10 }
 0x6a9   :  { %4398 = vpow2.f32 %v3629_v45  ;;  %v3625_v12 = vmul.f32 -1.442695, %v1759_v46  ;;  %v5287_v45 = vld [vmem:[%s5616_s4 + $0x18] sm:$0x3f] }
 0x6ab   :  { %4400 = vpow2.f32 %v3625_v12 }
 0x6ac   :  { %v1932_v47 = vpop.f32.mrf.mxu1 }
 0x6ae   :  { %v4131_v48 = vpop.f32.mrf.mxu1 }
 0x6af   :  { %v5305_v48 = vld [vmem:[%s5616_s4 + $0x8] sm:$0xff] }
 0x6b6   :  { %v4399_v35 = vpop.eup %4398 }
 0x6b7   :  { %v1856_v62 = vadd.f32 1.0, %v4399_v35 }
 0x6b8   :  { %v4401_v49 = vpop.eup %4400 }
 0x6b9   :  { %4402 = vrcp.f32 %v1856_v62  ;;  %v1763_v50 = vadd.f32 1.0, %v4401_v49  ;;  %v5312_v62 = vld [vmem:[%s5616_s4] sm:$0xff] }
 0x6bb   :  { %4404 = vrcp.f32 %v1763_v50  ;;  %v5322_v50 = vld [vmem:[#allocation7 + $0x18] sm:$0x3f] }
 0x6c6   :  { %v4403_v52 = vpop.eup %4402 }
 0x6c7   :  { %v1859_v53 = vadd.f32 1.0, %v4403_v52  ;;  %v1862_v55 = vmul.f32 %v4403_v52, %v1852_v9  ;;  %v5331_v52 = vld [vmem:[#allocation7 + $0x10] sm:$0xff] }
 0x6c8   :  { %v4405_v54 = vpop.eup %4404 }
 0x6c9   :  { %v1860_v56 = vmax.f32 %v1859_v53, 1.0  ;;  %v1766_v57 = vadd.f32 1.0, %v4405_v54  ;;  %v1769_v19 = vmul.f32 %v4405_v54, %v1759_v46  ;;  %v5297_v46 = vld [vmem:[%s5616_s4 + $0x10] sm:$0xff]  ;;  %v5344_v54 = vld [vmem:[#allocation7] sm:$0xff] }
 0x6ca   :  { %v5338_v53 = vld [vmem:[#allocation7 + $0x8] sm:$0xff] }
 0x6cb   :  { %v1861_v58 = vmin.f32 %v1860_v56, 10.0  ;;  %v1767_v25 = vmax.f32 %v1766_v57, 1.0 }
 0x6cd   :  { %v1863_v60 = vmul.f32 %v1861_v58, %v5101_v51  ;;  %v1768_v63 = vmin.f32 %v1767_v25, 10.0 }
 0x6cf   :  { %v1864_v17 = vsub.f32 %v1862_v55, %v1863_v60  ;;  %v1770_v20 = vmul.f32 %v1768_v63, %v5136_v33 }
 0x6d1   :  { %v5204_v21 = vadd.f32 %v1864_v17, %v5101_v51  ;;  %2184 = vst.msk [vmem:[#allocation9 + $0x8] sm:$0x3] %vm545_vm2, %v1864_v17  ;;  %v1771_v22 = vsub.f32 %v1769_v19, %v1770_v20  ;;  %v5223_v51 = vld [vmem:[%s5613_s1 + $0x18] sm:$0x3f] }
 0x6d3   :  { %v5208_v23 = vadd.f32 %v1771_v22, %v5136_v33  ;;  %1778 = vst.msk [vmem:[#allocation12 + $0x6] sm:$0x3] %vm545_vm2, %v1771_v22  ;;  %4141 = vmatmul.mubr.msk.f32.vlgmr.msra.gmra.mxu0 %vm126_vm3, %v5204_v21 }
 0x6d4   :  { %4155 = vmatpush3.msk.msra.mxu0 %vm130_vm1, %v4877_v37  ;;  %4162 = vmatprep.mubr.msk.f32.mxu0 %vm4629_vm0, %v4628_v0 }
 0x6d5   :  { %4152 = vmatmul.mubr.msk.f32.vlgmr.msra.gmra.mxu1 %vm126_vm3, %v5208_v23  ;;  %4156 = vmatprep.subr.mxu0 %v4628_v0 }
 0x6d6   :  { %4166 = vmatpush3.msk.msra.mxu1 %vm130_vm1, %v5223_v51  ;;  %4173 = vmatprep.mubr.msk.f32.mxu1 %vm4629_vm0, %v4628_v0 }
 0x6d7   :  { %4167 = vmatprep.subr.mxu1 %v4628_v0  ;;  %4157 = vmatpush3.msra.mxu0 %v4882_v38 }
 0x6d8   :  { %4168 = vmatpush3.msra.mxu1 %v5234_v61  ;;  %4158 = vmatprep.subr.mxu0 %v4628_v0 }
 0x6d9   :  { %4169 = vmatprep.subr.mxu1 %v4628_v0  ;;  %4159 = vmatpush3.msra.mxu0 %v4886_v39 }
 0x6da   :  { %4170 = vmatpush3.msra.mxu1 %v5243_v24  ;;  %4160 = vmatprep.subr.mxu0 %v4628_v0 }
 0x6db   :  { %4171 = vmatprep.subr.mxu1 %v4628_v0  ;;  %4161 = vmatpush3.msra.mxu0 %v4890_v40 }
 0x6dc   :  { %4172 = vmatpush3.msra.mxu1 %v5252_v27  ;;  %4176 = vmatprep.subr.mxu0 %v4628_v0 }
 0x6dd   :  { %4174 = vmatmul.mubr.msk.f32.vlgmr.msra.gmra.mxu1 %vm126_vm3, %v5204_v21  ;;  %4187 = vmatprep.subr.mxu1 %v4628_v0 }
 0x6de   :  { %4188 = vmatpush3.msk.msra.mxu1 %vm130_vm1, %v4810_v13  ;;  %4195 = vmatprep.mubr.msk.f32.mxu1 %vm4629_vm0, %v4628_v0 }
 0x6df   :  { %4189 = vmatprep.subr.mxu1 %v4628_v0 }
 0x6e0   :  { %4190 = vmatpush3.msra.mxu1 %v4822_v14  ;;  %v3640_v14 = vld [vmem:[%s5612_s0 + $0xa] sm:$0x3] }
 0x6e1   :  { %4191 = vmatprep.subr.mxu1 %v4628_v0 }
 0x6e2   :  { %4192 = vmatpush3.msra.mxu1 %v4831_v15 }
 0x6e3   :  { %4193 = vmatprep.subr.mxu1 %v4628_v0 }
 0x6e4   :  { %4194 = vmatpush3.msra.mxu1 %v4840_v16 }
 0x6e5   :  { %4209 = vmatprep.subr.mxu1 %v4628_v0 }
 0x793   :  { %v2005_v28 = vpop.f32.mrf.mxu0 }
 0x794   :  { %v2006_v29 = vadd.f32 %v2005_v28, %v1932_v47 }
 0x795   :  { %v4142_v13 = vpop.f32.mrf.mxu0  ;;  %v5270_v30 = vpop.f32.mrf.mxu1 }
 0x796   :  { %v2009_v31 = vadd.f32 %v4900_v42, %v2006_v29 }
 0x797   :  { %v4153_v32 = vpop.f32.mrf.mxu1 }
 0x798   :  { %v3634_v33 = vmul.f32 -1.442695, %v2009_v31 }
 0x79a   :  { %4406 = vpow2.f32 %v3634_v33 }
 0x79d   :  { %v2257_v15 = vpop.f32.mrf.mxu1 }
 0x79e   :  { %v2261_v34 = vadd.f32 %v3640_v14, %v2257_v15 }
 0x79f   :  { %v4175_v36 = vpop.f32.mrf.mxu1 }
 0x7a0   :  { %v2262_v16 = vadd.f32 %v4851_v18, %v2261_v34 }
 0x7a2   :  { %v3643_v41 = vmul.f32 -1.442695, %v2262_v16 }
 0x7a4   :  { %4408 = vpow2.f32 %v3643_v41 }
 0x7a7   :  { %v4407_v59 = vpop.eup %4406 }
 0x7a8   :  { %v2013_v43 = vadd.f32 1.0, %v4407_v59 }
 0x7aa   :  { %4410 = vrcp.f32 %v2013_v43 }
 0x7b1   :  { %v4409_v44 = vpop.eup %4408 }
 0x7b2   :  { %v2266_v2 = vadd.f32 1.0, %v4409_v44  ;;  %v5390_v44 = vld [vmem:[%s5615_s3 + $0x18] sm:$0x3f] }
 0x7b4   :  { %4412 = vrcp.f32 %v2266_v2  ;;  %v5407_v2 = vld [vmem:[%s5615_s3 + $0x10] sm:$0xff] }
 0x7b7   :  { %v4411_v42 = vpop.eup %4410 }
 0x7b8   :  { %v2016_v3 = vadd.f32 1.0, %v4411_v42  ;;  %v2019_v6 = vmul.f32 %v4411_v42, %v2009_v31  ;;  %v5416_v42 = vld [vmem:[%s5615_s3 + $0x8] sm:$0xff] }
 0x7ba   :  { %v2017_v4 = vmax.f32 %v2016_v3, 1.0  ;;  %v5425_v3 = vld [vmem:[%s5615_s3] sm:$0xff] }
 0x7bc   :  { %v2018_v5 = vmin.f32 %v2017_v4, 10.0 }
 0x7be   :  { %v2020_v7 = vmul.f32 %v2018_v5, %v5153_v1 }
 0x7c0   :  { %v2021_v8 = vsub.f32 %v2019_v6, %v2020_v7  ;;  %v3654_v6 = vld [vmem:[%s5612_s0 + $0xc] sm:$0x3] }
 0x7c1   :  { %v4413_v9 = vpop.eup %4412 }
 0x7c2   :  { %v5279_v10 = vadd.f32 %v2021_v8, %v5153_v1  ;;  %2186 = vst.msk [vmem:[#allocation11 + $0x8] sm:$0x3] %vm545_vm2, %v2021_v8  ;;  %v2269_v18 = vadd.f32 1.0, %v4413_v9  ;;  %v2272_v12 = vmul.f32 %v4413_v9, %v2262_v16 }
 0x7c4   :  { %v2270_v11 = vmax.f32 %v2269_v18, 1.0  ;;  %4163 = vmatmul.mubr.msk.f32.vlgmr.msra.gmra.mxu0 %vm126_vm3, %v5279_v10  ;;  %v5447_v18 = vld [vmem:[#allocation2] ss:$0 sm:$0xff] }
 0x7c5   :  { %4177 = vmatpush3.msk.msra.mxu0 %vm130_vm1, %v5287_v45  ;;  %4184 = vmatprep.mubr.msk.f32.mxu0 %vm4629_vm0, %v4628_v0 }
 0x7c6   :  { %v2271_v1 = vmin.f32 %v2270_v11, 10.0  ;;  %4178 = vmatprep.subr.mxu0 %v4628_v0 }
 0x7c7   :  { %4179 = vmatpush3.msra.mxu0 %v5297_v46 }
 0x7c8   :  { %v2273_v47 = vmul.f32 %v2271_v1, %v5204_v21  ;;  %4180 = vmatprep.subr.mxu0 %v4628_v0 }
 0x7c9   :  { %4181 = vmatpush3.msra.mxu0 %v5305_v48 }
 0x7ca   :  { %v2274_v35 = vsub.f32 %v2272_v12, %v2273_v47  ;;  %4182 = vmatprep.subr.mxu0 %v4628_v0 }
 0x7cb   :  { %4183 = vmatpush3.msra.mxu0 %v5312_v62 }
 0x7cc   :  { %v5316_v49 = vadd.f32 %v2274_v35, %v5204_v21  ;;  %2594 = vst.msk [vmem:[#allocation9 + $0xa] sm:$0x3] %vm545_vm2, %v2274_v35  ;;  %4185 = vmatmul.mubr.msk.f32.vlgmr.msra.gmra.mxu0 %vm126_vm3, %v5279_v10  ;;  %4198 = vmatprep.subr.mxu0 %v4628_v0  ;;  %v5453_v35 = vld [vmem:[%s5620_s8] ss:$0 sm:$0xff] }
 0x7cd   :  { %4199 = vmatpush3.msk.msra.mxu0 %vm130_vm1, %v5322_v50  ;;  %4206 = vmatprep.mubr.msk.f32.mxu0 %vm4629_vm0, %v4628_v0 }
 0x7ce   :  { %4196 = vmatmul.mubr.msk.f32.vlgmr.msra.gmra.mxu1 %vm126_vm3, %v5316_v49  ;;  %4200 = vmatprep.subr.mxu0 %v4628_v0 }
 0x7cf   :  { %4201 = vmatpush3.msra.mxu0 %v5331_v52  ;;  %4210 = vmatpush3.msk.msra.mxu1 %vm130_vm1, %v4877_v37 }
 0x7d0   :  { %4202 = vmatprep.subr.mxu0 %v4628_v0  ;;  %4211 = vmatprep.subr.mxu1 %v4628_v0 }
 0x7d1   :  { %4203 = vmatpush3.msra.mxu0 %v5338_v53  ;;  %4212 = vmatpush3.msra.mxu1 %v4882_v38 }
 0x7d2   :  { %4204 = vmatprep.subr.mxu0 %v4628_v0  ;;  %4213 = vmatprep.subr.mxu1 %v4628_v0 }
 0x7d3   :  { %4205 = vmatpush3.msra.mxu0 %v5344_v54  ;;  %4214 = vmatpush3.msra.mxu1 %v4886_v39 }
 0x7d4   :  { %4220 = vmatprep.subr.mxu0 %v4628_v0  ;;  %4215 = vmatprep.subr.mxu1 %v4628_v0 }
 0x7d5   :  { %4216 = vmatpush3.msra.mxu1 %v4890_v40  ;;  %4217 = vmatprep.mubr.msk.f32.mxu1 %vm4629_vm0, %v4628_v0  ;;  %v5359_v40 = vld [vmem:[%s5617_s5] ss:$0 sm:$0xff] }
 0x7d6   :  { %4231 = vmatprep.subr.mxu1 %v4628_v0 }
 0x884   :  { %v2165_v37 = vpop.f32.mrf.mxu0 }
 0x885   :  { %v2166_v38 = vadd.f32 %v2165_v37, %v5270_v30 }
 0x886   :  { %v4164_v56 = vpop.f32.mrf.mxu0 }
 0x887   :  { %v2169_v57 = vadd.f32 %v4955_v26, %v2166_v38 }
 0x889   :  { %v3639_v58 = vmul.f32 -1.442695, %v2169_v57 }
 0x88b   :  { %4414 = vpow2.f32 %v3639_v58 }
 0x88c   :  { %v2342_v39 = vpop.f32.mrf.mxu0 }
 0x88e   :  { %v4186_v25 = vpop.f32.mrf.mxu0  ;;  %v2415_v55 = vpop.f32.mrf.mxu1 }
 0x88f   :  { %v2416_v60 = vadd.f32 %v2415_v55, %v2342_v39 }
 0x890   :  { %v4197_v63 = vpop.f32.mrf.mxu1 }
 0x891   :  { %v2419_v17 = vadd.f32 %v5359_v40, %v2416_v60 }
 0x893   :  { %v3648_v19 = vmul.f32 -1.442695, %v2419_v17 }
 0x895   :  { %4416 = vpow2.f32 %v3648_v19 }
 0x898   :  { %v4415_v20 = vpop.eup %4414 }
 0x899   :  { %v2173_v21 = vadd.f32 1.0, %v4415_v20 }
 0x89b   :  { %4418 = vrcp.f32 %v2173_v21 }
 0x8a2   :  { %v4417_v26 = vpop.eup %4416 }
 0x8a3   :  { %v2423_v22 = vadd.f32 1.0, %v4417_v26 }
 0x8a5   :  { %4420 = vrcp.f32 %v2423_v22 }
 0x8a8   :  { %v4419_v28 = vpop.eup %4418 }
 0x8a9   :  { %v2176_v29 = vadd.f32 1.0, %v4419_v28  ;;  %v2179_v31 = vmul.f32 %v4419_v28, %v2169_v57 }
 0x8ab   :  { %v2177_v13 = vmax.f32 %v2176_v29, 1.0 }
 0x8ad   :  { %v2178_v30 = vmin.f32 %v2177_v13, 10.0 }
 0x8af   :  { %v2180_v32 = vmul.f32 %v2178_v30, %v5208_v23 }
 0x8b1   :  { %v2181_v33 = vsub.f32 %v2179_v31, %v2180_v32 }
 0x8b2   :  { %v4421_v14 = vpop.eup %4420 }
 0x8b3   :  { %v5364_v15 = vadd.f32 %v2181_v33, %v5208_v23  ;;  %2188 = vst.msk [vmem:[#allocation12 + $0x8] sm:$0x3] %vm545_vm2, %v2181_v33  ;;  %v2426_v34 = vadd.f32 1.0, %v4421_v14  ;;  %v2429_v23 = vmul.f32 %v4421_v14, %v2419_v17 }
 0x8b5   :  { %v2427_v36 = vmax.f32 %v2426_v34, 1.0  ;;  %4207 = vmatmul.mubr.msk.f32.vlgmr.msra.gmra.mxu0 %vm126_vm3, %v5364_v15  ;;  %v5468_v34 = vld [vmem:[#allocation5 + $0x18] sm:$0x3f] }
 0x8b6   :  { %4221 = vmatpush3.msk.msra.mxu0 %vm130_vm1, %v5223_v51  ;;  %4228 = vmatprep.mubr.msk.f32.mxu0 %vm4629_vm0, %v4628_v0 }
 0x8b7   :  { %v2428_v16 = vmin.f32 %v2427_v36, 10.0  ;;  %4222 = vmatprep.subr.mxu0 %v4628_v0 }
 0x8b8   :  { %4223 = vmatpush3.msra.mxu0 %v5234_v61 }
 0x8b9   :  { %v2430_v41 = vmul.f32 %v2428_v16, %v5279_v10  ;;  %4224 = vmatprep.subr.mxu0 %v4628_v0 }
 0x8ba   :  { %4225 = vmatpush3.msra.mxu0 %v5243_v24 }
 0x8bb   :  { %v2431_v59 = vsub.f32 %v2429_v23, %v2430_v41  ;;  %4226 = vmatprep.subr.mxu0 %v4628_v0 }
 0x8bc   :  { %4227 = vmatpush3.msra.mxu0 %v5252_v27 }
 0x8bd   :  { %v5381_v43 = vadd.f32 %v2431_v59, %v5279_v10  ;;  %2596 = vst.msk [vmem:[#allocation11 + $0xa] sm:$0x3] %vm545_vm2, %v2431_v59  ;;  %4229 = vmatmul.mubr.msk.f32.vlgmr.msra.gmra.mxu0 %vm126_vm3, %v5316_v49  ;;  %4242 = vmatprep.subr.mxu0 %v4628_v0  ;;  %v3668_v59 = vld [vmem:[%s5612_s0 + $0xe] sm:$0x3] }
 0x8be   :  { %4243 = vmatpush3.msk.msra.mxu0 %vm130_vm1, %v5390_v44  ;;  %4250 = vmatprep.mubr.msk.f32.mxu0 %vm4629_vm0, %v4628_v0 }
 0x8bf   :  { %4218 = vmatmul.mubr.msk.f32.vlgmr.msra.gmra.mxu1 %vm126_vm3, %v5381_v43  ;;  %4244 = vmatprep.subr.mxu0 %v4628_v0 }
 0x8c0   :  { %4232 = vmatpush3.msk.msra.mxu1 %vm130_vm1, %v5287_v45  ;;  %4239 = vmatprep.mubr.msk.f32.mxu1 %vm4629_vm0, %v4628_v0 }
 0x8c1   :  { %4233 = vmatprep.subr.mxu1 %v4628_v0  ;;  %4245 = vmatpush3.msra.mxu0 %v5407_v2 }
 0x8c2   :  { %4234 = vmatpush3.msra.mxu1 %v5297_v46  ;;  %4246 = vmatprep.subr.mxu0 %v4628_v0 }
 0x8c3   :  { %4235 = vmatprep.subr.mxu1 %v4628_v0  ;;  %4247 = vmatpush3.msra.mxu0 %v5416_v42 }
 0x8c4   :  { %4236 = vmatpush3.msra.mxu1 %v5305_v48  ;;  %4248 = vmatprep.subr.mxu0 %v4628_v0 }
 0x8c5   :  { %4237 = vmatprep.subr.mxu1 %v4628_v0  ;;  %4249 = vmatpush3.msra.mxu0 %v5425_v3 }
 0x8c6   :  { %4238 = vmatpush3.msra.mxu1 %v5312_v62  ;;  %4264 = vmatprep.subr.mxu0 %v4628_v0 }
 0x8c7   :  { %4240 = vmatmul.mubr.msk.f32.vlgmr.msra.gmra.mxu1 %vm126_vm3, %v5381_v43  ;;  %4253 = vmatprep.subr.mxu1 %v4628_v0 }
 0x8c8   :  { %4254 = vmatpush3.msk.msra.mxu1 %vm130_vm1, %v5322_v50  ;;  %4261 = vmatprep.mubr.msk.f32.mxu1 %vm4629_vm0, %v4628_v0 }
 0x8c9   :  { %4255 = vmatprep.subr.mxu1 %v4628_v0 }
 0x8ca   :  { %4256 = vmatpush3.msra.mxu1 %v5331_v52 }
 0x8cb   :  { %4257 = vmatprep.subr.mxu1 %v4628_v0 }
 0x8cc   :  { %4258 = vmatpush3.msra.mxu1 %v5338_v53 }
 0x8cd   :  { %4259 = vmatprep.subr.mxu1 %v4628_v0 }
 0x8ce   :  { %4260 = vmatpush3.msra.mxu1 %v5344_v54 }
 0x8cf   :  { %4275 = vmatprep.subr.mxu1 %v4628_v0 }
 0x975   :  { %v2502_v4 = vpop.f32.mrf.mxu0 }
 0x977   :  { %v4208_v5 = vpop.f32.mrf.mxu0 }
 0x97d   :  { %v2667_v7 = vpop.f32.mrf.mxu0 }
 0x97e   :  { %v2671_v8 = vadd.f32 %v3654_v6, %v2667_v7 }
 0x97f   :  { %v2575_v9 = vpop.f32.mrf.mxu1  ;;  %v4230_v10 = vpop.f32.mrf.mxu0 }
 0x980   :  { %v2672_v11 = vadd.f32 %v5447_v18, %v2671_v8  ;;  %v2576_v1 = vadd.f32 %v2575_v9, %v2502_v4 }
 0x981   :  { %v4219_v12 = vpop.f32.mrf.mxu1 }
 0x982   :  { %v3657_v47 = vmul.f32 -1.442695, %v2672_v11  ;;  %v2579_v37 = vadd.f32 %v5453_v35, %v2576_v1 }
 0x984   :  { %4422 = vpow2.f32 %v3657_v47  ;;  %v3653_v38 = vmul.f32 -1.442695, %v2579_v37 }
 0x986   :  { %4424 = vpow2.f32 %v3653_v38 }
 0x987   :  { %v2752_v56 = vpop.f32.mrf.mxu1 }
 0x989   :  { %v4241_v57 = vpop.f32.mrf.mxu1 }
 0x991   :  { %v4423_v58 = vpop.eup %4422 }
 0x992   :  { %v2676_v39 = vadd.f32 1.0, %v4423_v58 }
 0x993   :  { %v4425_v25 = vpop.eup %4424 }
 0x994   :  { %4426 = vrcp.f32 %v2676_v39  ;;  %v2583_v55 = vadd.f32 1.0, %v4425_v25 }
 0x996   :  { %4428 = vrcp.f32 %v2583_v55 }
 0x9a1   :  { %v4427_v60 = vpop.eup %4426 }
 0x9a2   :  { %v2679_v63 = vadd.f32 1.0, %v4427_v60  ;;  %v2682_v22 = vmul.f32 %v4427_v60, %v2672_v11 }
 0x9a3   :  { %v4429_v17 = vpop.eup %4428 }
 0x9a4   :  { %v2680_v19 = vmax.f32 %v2679_v63, 1.0  ;;  %v2586_v20 = vadd.f32 1.0, %v4429_v17  ;;  %v2589_v30 = vmul.f32 %v4429_v17, %v2579_v37 }
 0x9a6   :  { %v2681_v21 = vmin.f32 %v2680_v19, 10.0  ;;  %v2587_v26 = vmax.f32 %v2586_v20, 1.0 }
 0x9a8   :  { %v2683_v28 = vmul.f32 %v2681_v21, %v5316_v49  ;;  %v2588_v29 = vmin.f32 %v2587_v26, 10.0 }
 0x9aa   :  { %v2684_v13 = vsub.f32 %v2682_v22, %v2683_v28  ;;  %v2590_v31 = vmul.f32 %v2588_v29, %v5364_v15 }
 0x9ac   :  { %v5459_v32 = vadd.f32 %v2684_v13, %v5316_v49  ;;  %3004 = vst.msk [vmem:[#allocation9 + $0xc] sm:$0x3] %vm545_vm2, %v2684_v13  ;;  %v2591_v33 = vsub.f32 %v2589_v30, %v2590_v31  ;;  %v5482_v49 = vld [vmem:[#allocation5 + $0x10] sm:$0xff] }
 0x9ae   :  { %v5463_v14 = vadd.f32 %v2591_v33, %v5364_v15  ;;  %2598 = vst.msk [vmem:[#allocation12 + $0xa] sm:$0x3] %vm545_vm2, %v2591_v33  ;;  %4251 = vmatmul.mubr.msk.f32.vlgmr.msra.gmra.mxu0 %vm126_vm3, %v5459_v32  ;;  %v5488_v15 = vld [vmem:[#allocation5 + $0x8] sm:$0xff] }
 0x9af   :  { %4265 = vmatpush3.msk.msra.mxu0 %vm130_vm1, %v5468_v34  ;;  %4272 = vmatprep.mubr.msk.f32.mxu0 %vm4629_vm0, %v4628_v0 }
 0x9b0   :  { %4262 = vmatmul.mubr.msk.f32.vlgmr.msra.gmra.mxu1 %vm126_vm3, %v5463_v14  ;;  %4266 = vmatprep.subr.mxu0 %v4628_v0 }
 0x9b1   :  { %4276 = vmatpush3.msk.msra.mxu1 %vm130_vm1, %v5223_v51  ;;  %4283 = vmatprep.mubr.msk.f32.mxu1 %vm4629_vm0, %v4628_v0  ;;  %v5494_v51 = vld [vmem:[#allocation5] sm:$0xff] }
 0x9b2   :  { %4277 = vmatprep.subr.mxu1 %v4628_v0  ;;  %4267 = vmatpush3.msra.mxu0 %v5482_v49 }
 0x9b3   :  { %4278 = vmatpush3.msra.mxu1 %v5234_v61  ;;  %4268 = vmatprep.subr.mxu0 %v4628_v0 }
 0x9b4   :  { %4279 = vmatprep.subr.mxu1 %v4628_v0  ;;  %4269 = vmatpush3.msra.mxu0 %v5488_v15 }
 0x9b5   :  { %4280 = vmatpush3.msra.mxu1 %v5243_v24  ;;  %4270 = vmatprep.subr.mxu0 %v4628_v0 }
 0x9b6   :  { %4281 = vmatprep.subr.mxu1 %v4628_v0  ;;  %4271 = vmatpush3.msra.mxu0 %v5494_v51 }
 0x9b7   :  { %4282 = vmatpush3.msra.mxu1 %v5252_v27  ;;  %4286 = vmatprep.subr.mxu0 %v4628_v0 }
 0x9b8   :  { %4284 = vmatmul.mubr.msk.f32.vlgmr.msra.gmra.mxu1 %vm126_vm3, %v5459_v32  ;;  %4297 = vmatprep.subr.mxu1 %v4628_v0 }
 0x9b9   :  { %4298 = vmatpush3.msk.msra.mxu1 %vm130_vm1, %v5390_v44  ;;  %4305 = vmatprep.mubr.msk.f32.mxu1 %vm4629_vm0, %v4628_v0 }
 0x9ba   :  { %4299 = vmatprep.subr.mxu1 %v4628_v0 }
 0x9bb   :  { %4300 = vmatpush3.msra.mxu1 %v5407_v2 }
 0x9bc   :  { %4301 = vmatprep.subr.mxu1 %v4628_v0 }
 0x9bd   :  { %4302 = vmatpush3.msra.mxu1 %v5416_v42 }
 0x9be   :  { %4303 = vmatprep.subr.mxu1 %v4628_v0 }
 0x9bf   :  { %4304 = vmatpush3.msra.mxu1 %v5425_v3 }
 0x9c0   :  { %4319 = vmatprep.subr.mxu1 %v4628_v0 }
 0xa6e   :  { %v2825_v61 = vpop.f32.mrf.mxu0 }
 0xa6f   :  { %v2826_v24 = vadd.f32 %v2825_v61, %v2752_v56 }
 0xa70   :  { %v4252_v27 = vpop.f32.mrf.mxu0  ;;  %v5513_v36 = vpop.f32.mrf.mxu1 }
 0xa71   :  { %v2829_v16 = vadd.f32 %v5359_v40, %v2826_v24 }
 0xa72   :  { %v4263_v23 = vpop.f32.mrf.mxu1 }
 0xa73   :  { %v3662_v41 = vmul.f32 -1.442695, %v2829_v16  ;;  %v3420_v23 = vld [vmem:[%s5621_s9 + $0x8] sm:$0xff] }
 0xa75   :  { %4430 = vpow2.f32 %v3662_v41  ;;  %v3419_v41 = vld [vmem:[%s5621_s9] sm:$0xff] }
 0xa78   :  { %v3077_v44 = vpop.f32.mrf.mxu1 }
 0xa79   :  { %v3081_v2 = vadd.f32 %v3668_v59, %v3077_v44 }
 0xa7a   :  { %v4285_v42 = vpop.f32.mrf.mxu1 }
 0xa7b   :  { %v3082_v3 = vadd.f32 %v5447_v18, %v3081_v2 }
 0xa7d   :  { %v3671_v4 = vmul.f32 -1.442695, %v3082_v3 }
 0xa7f   :  { %4432 = vpow2.f32 %v3671_v4 }
 0xa82   :  { %v4431_v5 = vpop.eup %4430 }
 0xa83   :  { %v2833_v6 = vadd.f32 1.0, %v4431_v5 }
 0xa85   :  { %4434 = vrcp.f32 %v2833_v6 }
 0xa8c   :  { %v4433_v7 = vpop.eup %4432 }
 0xa8d   :  { %v3086_v8 = vadd.f32 1.0, %v4433_v7 }
 0xa8f   :  { %4436 = vrcp.f32 %v3086_v8 }
 0xa92   :  { %v4435_v9 = vpop.eup %4434 }
 0xa93   :  { %v2836_v10 = vadd.f32 1.0, %v4435_v9  ;;  %v2839_v12 = vmul.f32 %v4435_v9, %v2829_v16  ;;  %v3421_v16 = vld [vmem:[%s5621_s9 + $0x10] sm:$0xff] }
 0xa95   :  { %v2837_v11 = vmax.f32 %v2836_v10, 1.0 }
 0xa97   :  { %v2838_v1 = vmin.f32 %v2837_v11, 10.0 }
 0xa99   :  { %v2840_v47 = vmul.f32 %v2838_v1, %v5381_v43 }
 0xa9b   :  { %v2841_v37 = vsub.f32 %v2839_v12, %v2840_v47 }
 0xa9c   :  { %v4437_v38 = vpop.eup %4436 }
 0xa9d   :  { %v5522_v56 = vadd.f32 %v2841_v37, %v5381_v43  ;;  %3006 = vst.msk [vmem:[#allocation11 + $0xc] sm:$0x3] %vm545_vm2, %v2841_v37  ;;  %v3089_v18 = vadd.f32 1.0, %v4437_v38  ;;  %v3092_v43 = vmul.f32 %v4437_v38, %v3082_v3 }
 0xa9f   :  { %v3090_v57 = vmax.f32 %v3089_v18, 1.0  ;;  %4273 = vmatmul.mubr.msk.f32.vlgmr.msra.gmra.mxu0 %vm126_vm3, %v5522_v56 }
 0xaa0   :  { %4287 = vmatpush3.msk.msra.mxu0 %vm130_vm1, %v5287_v45  ;;  %4294 = vmatprep.mubr.msk.f32.mxu0 %vm4629_vm0, %v4628_v0 }
 0xaa1   :  { %v3091_v58 = vmin.f32 %v3090_v57, 10.0  ;;  %4288 = vmatprep.subr.mxu0 %v4628_v0 }
 0xaa2   :  { %4289 = vmatpush3.msra.mxu0 %v5297_v46 }
 0xaa3   :  { %v3093_v39 = vmul.f32 %v3091_v58, %v5459_v32  ;;  %4290 = vmatprep.subr.mxu0 %v4628_v0 }
 0xaa4   :  { %4291 = vmatpush3.msra.mxu0 %v5305_v48 }
 0xaa5   :  { %v3094_v25 = vsub.f32 %v3092_v43, %v3093_v39  ;;  %4292 = vmatprep.subr.mxu0 %v4628_v0 }
 0xaa6   :  { %4293 = vmatpush3.msra.mxu0 %v5312_v62 }
 0xaa7   :  { %v3095_v45 = vadd.f32 %v3094_v25, %v5459_v32  ;;  %3414 = vst.msk [vmem:[#allocation9 + $0xe] sm:$0x3] %vm545_vm2, %v3094_v25  ;;  %4295 = vmatmul.mubr.msk.f32.vlgmr.msra.gmra.mxu0 %vm126_vm3, %v5522_v56  ;;  %4308 = vmatprep.subr.mxu0 %v4628_v0 }
 0xaa8   :  { %4309 = vmatpush3.msk.msra.mxu0 %vm130_vm1, %v5322_v50  ;;  %4316 = vmatprep.mubr.msk.f32.mxu0 %vm4629_vm0, %v4628_v0 }
 0xaa9   :  { %4306 = vmatmul.mubr.msk.f32.vlgmr.msra.gmra.mxu1 %vm126_vm3, %v3095_v45  ;;  %4310 = vmatprep.subr.mxu0 %v4628_v0 }
 0xaaa   :  { %4311 = vmatpush3.msra.mxu0 %v5331_v52  ;;  %4320 = vmatpush3.msk.msra.mxu1 %vm130_vm1, %v5468_v34 }
 0xaab   :  { %4312 = vmatprep.subr.mxu0 %v4628_v0  ;;  %4321 = vmatprep.subr.mxu1 %v4628_v0 }
 0xaac   :  { %4313 = vmatpush3.msra.mxu0 %v5338_v53  ;;  %4322 = vmatpush3.msra.mxu1 %v5482_v49 }
 0xaad   :  { %4314 = vmatprep.subr.mxu0 %v4628_v0  ;;  %4323 = vmatprep.subr.mxu1 %v4628_v0 }
 0xaae   :  { %4315 = vmatpush3.msra.mxu0 %v5344_v54  ;;  %4324 = vmatpush3.msra.mxu1 %v5488_v15 }
 0xaaf   :  { %4325 = vmatprep.subr.mxu1 %v4628_v0  ;;  %4327 = vmatprep.mubr.msk.f32.mxu1 %vm4629_vm0, %v4628_v0 }
 0xab0   :  { %4326 = vmatpush3.msra.mxu1 %v5494_v51  ;;  %4330 = vmatprep.subr.mxu0 %v4628_v0 }
 0xb5f   :  { %v2985_v46 = vpop.f32.mrf.mxu0 }
 0xb60   :  { %v2986_v48 = vadd.f32 %v2985_v46, %v5513_v36 }
 0xb61   :  { %v4274_v62 = vpop.f32.mrf.mxu0 }
 0xb62   :  { %v2989_v50 = vadd.f32 %v5453_v35, %v2986_v48 }
 0xb64   :  { %v3667_v52 = vmul.f32 -1.442695, %v2989_v50 }
 0xb66   :  { %4438 = vpow2.f32 %v3667_v52 }
 0xb67   :  { %v3162_v53 = vpop.f32.mrf.mxu0 }
 0xb69   :  { %v4296_v54 = vpop.f32.mrf.mxu0  ;;  %v3235_v55 = vpop.f32.mrf.mxu1 }
 0xb6a   :  { %v3236_v60 = vadd.f32 %v3235_v55, %v3162_v53 }
 0xb6b   :  { %v4307_v63 = vpop.f32.mrf.mxu1 }
 0xb6c   :  { %v3239_v17 = vadd.f32 %v5359_v40, %v3236_v60 }
 0xb6e   :  { %v3676_v19 = vmul.f32 -1.442695, %v3239_v17 }
 0xb70   :  { %4440 = vpow2.f32 %v3676_v19 }
 0xb73   :  { %v4439_v20 = vpop.eup %4438 }
 0xb74   :  { %v2993_v21 = vadd.f32 1.0, %v4439_v20 }
 0xb76   :  { %4442 = vrcp.f32 %v2993_v21 }
 0xb7d   :  { %v4441_v26 = vpop.eup %4440 }
 0xb7e   :  { %v3243_v22 = vadd.f32 1.0, %v4441_v26 }
 0xb80   :  { %4444 = vrcp.f32 %v3243_v22 }
 0xb83   :  { %v4443_v28 = vpop.eup %4442 }
 0xb84   :  { %v2996_v29 = vadd.f32 1.0, %v4443_v28  ;;  %v2999_v31 = vmul.f32 %v4443_v28, %v2989_v50 }
 0xb86   :  { %v2997_v13 = vmax.f32 %v2996_v29, 1.0 }
 0xb88   :  { %v2998_v30 = vmin.f32 %v2997_v13, 10.0 }
 0xb8a   :  { %v3000_v32 = vmul.f32 %v2998_v30, %v5463_v14 }
 0xb8c   :  { %v3001_v33 = vsub.f32 %v2999_v31, %v3000_v32 }
 0xb8d   :  { %v4445_v34 = vpop.eup %4444 }
 0xb8e   :  { %v3002_v49 = vadd.f32 %v3001_v33, %v5463_v14  ;;  %3008 = vst.msk [vmem:[#allocation12 + $0xc] sm:$0x3] %vm545_vm2, %v3001_v33  ;;  %v3246_v40 = vadd.f32 1.0, %v4445_v34  ;;  %v3249_v61 = vmul.f32 %v4445_v34, %v3239_v17  ;;  %v3422_v14 = vld [vmem:[%s5621_s9 + $0x18] sm:$0x3f]  ;;  %s4630_s9 = smov [#allocation9]  }
 0xb8f   :  { %s3523_s28 = sshll.u32 %s4630_s9, 4  ;;  %s3524_s28 = int_to_ptr.vmem [resolvable:$true] %s3523_s28 }
 0xb90   :  { %v3247_v15 = vmax.f32 %v3246_v40, 1.0  ;;  %4317 = vmatmul.mubr.msk.f32.vlgmr.msra.gmra.mxu0 %vm126_vm3, %v3002_v49  ;;  %s4533_s4 = scalar_lea.vmem %s3524_s28, 256  ;;  %p4538_p2 = scmp.lt.s32.totalorder %s3524_s28, %s3524_s28 }
 0xb91   :  { %4338 = vmatprep.mubr.msk.f32.mxu0 %vm4629_vm0, %v4628_v0  ;;  %4331 = vmatpush3.msk.msra.mxu0 %vm130_vm1, %v3422_v14  ;;  %p4534_p1 = scmp.ne.s32.totalorder %s3524_s28, %s4533_s4  ;;  %p4539_p3 = scmp.lt.s32.totalorder %s4533_s4, %s4533_s4 }
 0xb92   :  { %v3248_v51 = vmin.f32 %v3247_v15, 10.0  ;;  %4332 = vmatprep.subr.mxu0 %v4628_v0 }
 0xb93   :  { %4333 = vmatpush3.msra.mxu0 %v3421_v16  ;;  %p4540_p4 = por %p4539_p3, %p4538_p2 }
 0xb94   :  { %v3250_v24 = vmul.f32 %v3248_v51, %v5522_v56  ;;  %4334 = vmatprep.subr.mxu0 %v4628_v0 }
 0xb95   :  { %4335 = vmatpush3.msra.mxu0 %v3420_v23  ;;  %p4541_p5 = pnand %p4540_p4, %p4534_p1 }
 0xb96   :  { %v3251_v27 = vsub.f32 %v3249_v61, %v3250_v24  ;;  %4336 = vmatprep.subr.mxu0 %v4628_v0 }
 0xb97   :  { %4337 = vmatpush3.msra.mxu0 %v3419_v41 }
 0xb98   :  { %v3252_v36 = vadd.f32 %v3251_v27, %v5522_v56  ;;  %3416 = vst.msk [vmem:[#allocation11 + $0xe] sm:$0x3] %vm545_vm2, %v3251_v27 }
 0xb9a   :  { %4328 = vmatmul.mubr.msk.f32.vlgmr.msra.gmra.mxu1 %vm126_vm3, %v3252_v36 }
 0xc50   :  { %v3322_v59 = vpop.f32.mrf.mxu0 }
 0xc52   :  { %v4318_v44 = vpop.f32.mrf.mxu0 }
 0xc5a   :  { %v3395_v2 = vpop.f32.mrf.mxu1 }
 0xc5b   :  { %v3396_v42 = vadd.f32 %v3395_v2, %v3322_v59 }
 0xc5c   :  { %v4329_v3 = vpop.f32.mrf.mxu1 }
 0xc5d   :  { %v3399_v4 = vadd.f32 %v5453_v35, %v3396_v42 }
 0xc5f   :  { %v3681_v5 = vmul.f32 -1.442695, %v3399_v4 }
 0xc61   :  { %4446 = vpow2.f32 %v3681_v5 }
 0xc6e   :  { %v4447_v6 = vpop.eup %4446 }
 0xc6f   :  { %v3403_v7 = vadd.f32 1.0, %v4447_v6 }
 0xc71   :  { %4448 = vrcp.f32 %v3403_v7 }
 0xc7e   :  { %v4449_v8 = vpop.eup %4448 }
 0xc7f   :  { %v3406_v9 = vadd.f32 1.0, %v4449_v8  ;;  %v3409_v11 = vmul.f32 %v4449_v8, %v3399_v4 }
 0xc81   :  { %v3407_v0 = vmax.f32 %v3406_v9, 1.0 }
 0xc83   :  { %v3408_v10 = vmin.f32 %v3407_v0, 10.0 }
 0xc85   :  { %v3410_v1 = vmul.f32 %v3408_v10, %v3002_v49 }
 0xc87   :  { %v3411_v12 = vsub.f32 %v3409_v11, %v3410_v1 }
 0xc89   :  { %v3412_v47 = vadd.f32 %v3411_v12, %v3002_v49  ;;  %3418 = vst.msk [vmem:[#allocation12 + $0xe] sm:$0x3] %vm545_vm2, %v3411_v12 }
 0xc8b   :  { %4339 = vmatmul.mubr.msk.f32.vlgmr.msra.gmra.mxu0 %vm126_vm3, %v3412_v47 }
 0xc8c   :  { %4544 = shalt.err (!%p4541_p5)
}
 0xc8d   :  { %s4631_s6 = smov 32   ;;  %s4632_s5 = smov 2  }
 0xc8e   :  { %3529 = dma.vmem_to_hbm [thread:$0]  %s3524_s28, 256, %s5624_s12, [#allocation10], %s4631_s6, %s4631_s6, %s4632_s5  }
 0xc8f   :  { %s4633_s30 = smov [#allocation11]   ;;  %s4634_s15 = smov [#allocation12]  }
 0xc90   :  { %s3535_s7 = sshll.u32 %s4633_s30, 4  ;;  %s3547_s16 = sshll.u32 %s4634_s15, 4  ;;  %s3536_s7 = int_to_ptr.vmem [resolvable:$true] %s3535_s7  ;;  %s3548_s16 = int_to_ptr.vmem [resolvable:$true] %s3547_s16 }
 0xc91   :  { %s4553_s17 = scalar_lea.vmem %s3536_s7, 256  ;;  %p4558_p7 = scmp.lt.s32.totalorder %s3536_s7, %s3536_s7 }
 0xc92   :  { %p4554_p6 = scmp.ne.s32.totalorder %s3536_s7, %s4553_s17  ;;  %p4559_p8 = scmp.lt.s32.totalorder %s4553_s17, %s4553_s17 }
 0xc94   :  { %p4560_p9 = por %p4559_p8, %p4558_p7 }
 0xc96   :  { %p4561_p10 = pnand %p4560_p9, %p4554_p6 }
 0xc98   :  { %4564 = shalt.err (!%p4561_p10)
}
 0xc99   :  { %3541 = dma.vmem_to_hbm [thread:$0]  %s3536_s7, 256, %s5625_s13, [#allocation10], %s4631_s6, %s4631_s6, %s4632_s5  }
 0xc9a   :  { %s4573_s19 = scalar_lea.vmem %s3548_s16, 256  ;;  %p4578_p12 = scmp.lt.s32.totalorder %s3548_s16, %s3548_s16 }
 0xc9b   :  { %p4574_p11 = scmp.ne.s32.totalorder %s3548_s16, %s4573_s19  ;;  %p4579_p13 = scmp.lt.s32.totalorder %s4573_s19, %s4573_s19 }
 0xc9d   :  { %p4580_p0 = por %p4579_p13, %p4578_p12 }
 0xc9f   :  { %p4581_p1 = pnand %p4580_p0, %p4574_p11 }
 0xca1   :  { %4584 = shalt.err (!%p4581_p1)
}
 0xca2   :  { %3553 = dma.vmem_to_hbm [thread:$0]  %s3548_s16, 256, %s5626_s14, [#allocation13], %s4631_s6, %s4631_s6, %s4632_s5   ;;  %vm3506_vm4 = vcmask 9216  }
 0xca3   :  { %v3682_v35 = vld [vmem:[%s5622_s10] ss:$0 sm:$0xff]  ;;  %s4635_s0 = smov [#allocation8]  }
 0xca4   :  { %s3514_s21 = sshll.u32 %s4635_s0, 4  ;;  %s3515_s21 = int_to_ptr.vmem [resolvable:$true] %s3514_s21 }
 0xca5   :  { %s4593_s13 = scalar_lea.vmem %s3515_s21, 32  ;;  %p4598_p3 = scmp.lt.s32.totalorder %s3515_s21, %s3515_s21 }
 0xca6   :  { %p4594_p2 = scmp.ne.s32.totalorder %s3515_s21, %s4593_s13  ;;  %p4599_p4 = scmp.lt.s32.totalorder %s4593_s13, %s4593_s13 }
 0xca8   :  { %p4600_p5 = por %p4599_p4, %p4598_p3 }
 0xcaa   :  { %p4601_p6 = pnand %p4600_p5, %p4594_p2 }
 0xd4b   :  { %v3502_v37 = vpop.f32.mrf.mxu0 }
 0xd4c   :  { %v3503_v38 = vadd.f32 %v3682_v35, %v3502_v37 }
 0xd4d   :  { %v4340_v56 = vpop.f32.mrf.mxu0 }
 0xd4e   :  { %3507 = vst.msk [vmem:[#allocation8] sm:$0x3] %vm3506_vm4, %v3503_v38 }
 0xd4f   :  { %4604 = shalt.err (!%p4601_p6)
}
 0xd50   :  { %3517 = dma.vmem_to_hbm [thread:$0]  %s3515_s21, 32, %s5623_s11, [#allocation4]  }
 0xd51   :  { %4617 = dma.done.wait [#allocation4], 32  }
 0xd52   :  { %4618 = vsyncadd [#allocation4], 4294967264 }
 0xd53   :  { %4619 = dma.done.wait [#allocation10], 512  }
 0xd54   :  { %4620 = vsyncadd [#allocation10], 4294966784 }
 0xd55   :  { %4621 = dma.done.wait [#allocation13], 256  }
 0xd56   :  { %4622 = vsyncadd [#allocation13], 4294967040 }
 0xd57   :  { %3566 = vsyncpa [#allocation3], 1 }
 0xd58   :  { %3567 = vsyncpa [#allocation6], 1 }
 0xd59   :  { %3568 = vsyncpa [#allocation4], 1 }
 0xd5a   :  { %3569 = vsyncpa [#allocation10], 1 }
 0xd5b   :  { %3570 = vsyncpa [#allocation13], 1 }

</bundles_post_ra>
